<compile_context>
chip_gen: v7x
topology: tpu7x:2x2x1
jax: 0.10.0
libtpu: 0.0.40
codegen_flags: <defaults>
</compile_context>

<pallas_src>
import functools

import jax
import jax.numpy as jnp
from jax.experimental import pallas as pl
from jax.experimental.pallas import tpu as pltpu


# v7x has only 64 MiB VMEM per TensorCore; stay well under it (fine on v5e/v6e).
_VMEM_LIMIT = 48 * 1024 * 1024

# ConvTranspose2d(k=4, s=2, p=1): output index o = 2*m + parity.  With a
# 1-pixel zero-padded input xp (xp[j] = x[j-1]), output row 2m+parity reads
# padded rows m+off; _TAP_USERS[off] lists the (parity, kernel_tap) pairs that
# consume offset `off`.  The same table applies to the H and the W axis.
_TAP_USERS = {
    0: ((0, 3),),           # xp[m+0] = x[m-1] -> parity 0 via kernel tap 3
    1: ((0, 1), (1, 2)),    # xp[m+1] = x[m]   -> parity 0 tap 1, parity 1 tap 2
    2: ((1, 0),),           # xp[m+2] = x[m+1] -> parity 1 via kernel tap 0
}


def _apply_act(y, act):
    if act == "relu":
        return jnp.maximum(y, 0.0)
    if act == "tanh":
        return jnp.tanh(y)
    return y


# ----------------------------------------------------------------------------
# Fused ConvTranspose2d(k=4, s=2, p=1) + affine + activation kernel
# ----------------------------------------------------------------------------
def _deconv_kernel(x_ref, w_ref, s_ref, b_ref, o_ref, *,
                   th, W, Cout, act, direct):
    # x_ref: (H+2, W+2, Cin) bf16 -- whole padded image of one batch element,
    #        resident in VMEM across the row-block grid axis.
    # w_ref: (4, 4, Cin, Cout) bf16
    # s_ref, b_ref: (1, Cout) f32 -- folded BatchNorm scale / bias
    # o_ref direct layout:     (th, 2, W, 2*Cout)   [m, py, n, px*Cout + c]
    # o_ref transposed layout: (2, 2, Cout, th, W)  [py, px, c, m, n]
    i = pl.program_id(1)
    row0 = i * th
    scale = s_ref[...]
    bias = b_ref[...]

    parts = {(py, px): None for py in range(2) for px in range(2)}
    for ox in range(3):
        # (th+2, W, Cin) window shifted by `ox` along W (uses the zero padding).
        xw = x_ref[pl.ds(row0, th + 2), pl.ds(ox, W), :]
        for oy in range(3):
            xs = xw[oy:oy + th].reshape(th * W, -1)           # (th*W, Cin)
            for (py, ky) in _TAP_USERS[oy]:
                for (px, kx) in _TAP_USERS[ox]:
                    d = jnp.dot(xs, w_ref[ky, kx],
                                preferred_element_type=jnp.float32)
                    prev = parts[(py, px)]
                    parts[(py, px)] = d if prev is None else prev + d

    for py in range(2):
        for px in range(2):
            y = _apply_act(parts[(py, px)] * scale + bias, act)
            y = y.astype(o_ref.dtype)
            if direct:
                o_ref[:, py, :, px * Cout:(px + 1) * Cout] = (
                    y.reshape(th, W, Cout))
            else:
                yt = y.reshape(1, th * W) if Cout == 1 else y.T
                o_ref[py, px] = yt.reshape(Cout, th, W)


def deconv_s2(x_nhwc, w_pt, scale, bias, act):
    """ConvTranspose2d(Cin->Cout, kernel=4, stride=2, padding=1) fused with a
    per-channel affine (conv bias + folded BatchNorm) and an activation.
    x_nhwc: (B, H, W, Cin); w_pt: PyTorch layout (Cin, Cout, 4, 4).
    Returns NHWC (B, 2H, 2W, Cout) in bfloat16."""
    B, H, W, Cin = x_nhwc.shape
    Cout = w_pt.shape[1]
    th = min(H, 32)
    assert H % th == 0
    Hp, Wp = H + 2, W + 2

    # TODO(synk): the 1-pixel halo copy (jnp.pad) could be folded into the
    # kernel's window loads; in bf16 it is a small fraction of HBM traffic.
    xp = jnp.pad(x_nhwc.astype(jnp.bfloat16), ((0, 0), (1, 1), (1, 1), (0, 0)))
    wk = jnp.transpose(w_pt, (2, 3, 0, 1)).astype(jnp.bfloat16)  # (4,4,Cin,Cout)
    s2 = scale.reshape(1, Cout).astype(jnp.float32)
    b2 = bias.reshape(1, Cout).astype(jnp.float32)

    # Lane-dense output: interleave the W-parity into the channel dim (minor
    # dim = 2*Cout) when that is a multiple of 128; otherwise (final
    # channels==1 layer) store transposed so the minor dim is W.
    direct = (2 * Cout) % 128 == 0
    if direct:
        out_shape = jax.ShapeDtypeStruct((B, H, 2, W, 2 * Cout), jnp.bfloat16)
        out_spec = pl.BlockSpec((None, th, 2, W, 2 * Cout),
                                lambda b, i: (b, i, 0, 0, 0))
    else:
        out_shape = jax.ShapeDtypeStruct((2, 2, Cout, B, H, W), jnp.bfloat16)
        out_spec = pl.BlockSpec((2, 2, Cout, None, th, W),
                                lambda b, i: (0, 0, 0, b, i, 0))

    y = pl.pallas_call(
        functools.partial(_deconv_kernel, th=th, W=W, Cout=Cout,
                          act=act, direct=direct),
        out_shape=out_shape,
        grid_spec=pltpu.PrefetchScalarGridSpec(
            num_scalar_prefetch=0,
            grid=(B, H // th),
            in_specs=[
                # whole padded image of the current batch element; block index
                # is constant along the row-block axis -> fetched once.
                pl.BlockSpec((None, Hp, Wp, Cin), lambda b, i: (b, 0, 0, 0)),
                pl.BlockSpec((4, 4, Cin, Cout), lambda b, i: (0, 0, 0, 0)),
                pl.BlockSpec((1, Cout), lambda b, i: (0, 0)),
                pl.BlockSpec((1, Cout), lambda b, i: (0, 0)),
            ],
            out_specs=out_spec,
        ),
        compiler_params=pltpu.CompilerParams(
            dimension_semantics=("parallel", "parallel"),
            vmem_limit_bytes=_VMEM_LIMIT,
        ),
    )(xp, wk, s2, b2)

    if direct:
        # (B, H, 2, W, 2*Cout) -> (B, 2H, 2W, Cout): pure (free) reshape.
        return y.reshape(B, 2 * H, 2 * W, Cout)
    # (py, px, c, B, H, W) -> NHWC; cheap transpose of the small final output.
    y = jnp.transpose(y, (3, 4, 0, 5, 1, 2))
    return y.reshape(B, 2 * H, 2 * W, Cout)


# ----------------------------------------------------------------------------
# Fused matmul for layer 0 (ConvT on 1x1 input == plain matmul)
# ----------------------------------------------------------------------------
def _mm_kernel(x_ref, w_ref, s_ref, b_ref, o_ref, *, act):
    y = jnp.dot(x_ref[...], w_ref[...], preferred_element_type=jnp.float32)
    y = _apply_act(y * s_ref[...] + b_ref[...], act)
    o_ref[...] = y.astype(o_ref.dtype)


def fused_matmul(x, w, scale, bias, act, tn=4096):
    """act((x @ w) * scale + bias); scale/bias broadcast per output column."""
    M, K = x.shape
    _, N = w.shape
    tn = min(tn, N)
    while N % tn:
        tn //= 2
    return pl.pallas_call(
        functools.partial(_mm_kernel, act=act),
        out_shape=jax.ShapeDtypeStruct((M, N), jnp.bfloat16),
        grid_spec=pltpu.PrefetchScalarGridSpec(
            num_scalar_prefetch=0,
            grid=(N // tn,),
            in_specs=[
                pl.BlockSpec((M, K), lambda j: (0, 0)),
                pl.BlockSpec((K, tn), lambda j: (0, j)),
                pl.BlockSpec((1, tn), lambda j: (0, j)),
                pl.BlockSpec((1, tn), lambda j: (0, j)),
            ],
            out_specs=pl.BlockSpec((M, tn), lambda j: (0, j)),
        ),
        compiler_params=pltpu.CompilerParams(
            dimension_semantics=("parallel",),
            vmem_limit_bytes=_VMEM_LIMIT,
        ),
    )(x.astype(jnp.bfloat16), w.astype(jnp.bfloat16),
      scale.reshape(1, N).astype(jnp.float32),
      bias.reshape(1, N).astype(jnp.float32))


# ----------------------------------------------------------------------------
# Parameters (deterministic synthetic init, matching the module's shapes)
# ----------------------------------------------------------------------------
_CFG = [  # (Cin, Cout, has_batchnorm)
    (100, 1024, True),
    (1024, 512, True),
    (512, 256, True),
    (256, 128, True),
    (128, 64, True),
    (64, 64, True),
    (64, 64, True),
    (64, None, False),  # Cout = channels, no BN, Tanh output
]


def init_params(key, channels):
    params = []
    for cin, cout, has_bn in _CFG:
        cout = channels if cout is None else cout
        key, k1, k2, k3, k4, k5, k6 = jax.random.split(key, 7)
        p = {
            "W": 0.05 * jax.random.normal(k1, (cin, cout, 4, 4), jnp.float32),
            "b": 0.05 * jax.random.normal(k2, (cout,), jnp.float32),
        }
        if has_bn:
            p["gamma"] = 1.0 + 0.1 * jax.random.normal(k3, (cout,), jnp.float32)
            p["beta"] = 0.1 * jax.random.normal(k4, (cout,), jnp.float32)
            p["mean"] = 0.1 * jax.random.normal(k5, (cout,), jnp.float32)
            p["var"] = 1.0 + 0.1 * jnp.abs(
                jax.random.normal(k6, (cout,), jnp.float32))
        params.append(p)
    return params


def _fold_bn(p, eps=1e-5):
    # BatchNorm in inference mode (running stats), folded with the conv bias.
    # TODO(synk): training-mode BN (batch statistics) not reproduced here.
    scale = p["gamma"] * jax.lax.rsqrt(p["var"] + eps)
    bias = p["beta"] + (p["b"] - p["mean"]) * scale
    return scale, bias


# ----------------------------------------------------------------------------
# Generator forward (Pallas path)
# ----------------------------------------------------------------------------
def generator_forward(params, x_nchw):
    B = x_nchw.shape[0]

    # Layer 0: ConvT(100->1024, k4, s1, p0) on 1x1 input == plain matmul.
    p0 = params[0]
    cout0 = p0["W"].shape[1]
    scale0, bias0 = _fold_bn(p0)
    x2d = x_nchw.reshape(B, 100)
    w0 = jnp.transpose(p0["W"], (0, 2, 3, 1)).reshape(100, 16 * cout0)
    y0 = fused_matmul(x2d, w0, jnp.tile(scale0, 16), jnp.tile(bias0, 16), "relu")
    x = y0.reshape(B, 4, 4, cout0)  # NHWC, 4x4 spatial

    # Layers 1..7: ConvT(k4, s2, p1) (+ BN + ReLU; last layer + Tanh).
    for li in range(1, 8):
        p = params[li]
        if li == 7:
            scale = jnp.ones((p["W"].shape[1],), jnp.float32)
            bias = p["b"]
            act = "tanh"
        else:
            scale, bias = _fold_bn(p)
            act = "relu"
        x = deconv_s2(x, p["W"], scale, bias, act)

    return jnp.transpose(x, (0, 3, 1, 2)).astype(jnp.float32)  # NCHW


# ----------------------------------------------------------------------------
# Pure-JAX reference (PyTorch ConvTranspose2d semantics) for validation
# ----------------------------------------------------------------------------
def _deconv_ref(x_nhwc, w_pt, stride, pad):
    k = w_pt.shape[2]
    rhs = jnp.transpose(w_pt[:, :, ::-1, ::-1], (2, 3, 0, 1))  # (kh,kw,Cin,Cout)
    return jax.lax.conv_general_dilated(
        x_nhwc, rhs, window_strides=(1, 1),
        padding=[(k - 1 - pad, k - 1 - pad)] * 2,
        lhs_dilation=(stride, stride),
        dimension_numbers=("NHWC", "HWIO", "NHWC"))


def generator_forward_ref(params, x_nchw):
    bf = lambda a: a.astype(jnp.bfloat16).astype(jnp.float32)
    B = x_nchw.shape[0]
    x = bf(x_nchw).reshape(B, 1, 1, 100)
    for li, p in enumerate(params):
        stride, pad = (1, 0) if li == 0 else (2, 1)
        y = _deconv_ref(x, bf(p["W"]), stride, pad)
        if li < 7:
            scale, bias = _fold_bn(p)
            y = jnp.maximum(y * scale + bias, 0.0)
        else:
            y = jnp.tanh(y + p["b"])
        x = y
    return jnp.transpose(x, (0, 3, 1, 2))


if __name__ == "__main__":
    CHANNELS = 1
    BATCH = 2

    key = jax.random.PRNGKey(0)
    kp, kx, kv = jax.random.split(key, 3)
    params = init_params(kp, CHANNELS)
    x = jax.random.normal(kx, (BATCH, 100, 1, 1), jnp.float32)

    # 1) Numerical validation of the fused deconv kernel (both store layouts).
    kv1, kv2 = jax.random.split(kv)
    for cout in (64, CHANNELS):
        xv = jax.random.normal(kv1, (2, 8, 8, 16), jnp.float32)
        wv = 0.1 * jax.random.normal(kv2, (16, cout, 4, 4), jnp.float32)
        got = deconv_s2(xv, wv, jnp.ones((cout,), jnp.float32),
                        jnp.zeros((cout,), jnp.float32), "none")
        want = _deconv_ref(xv.astype(jnp.bfloat16).astype(jnp.float32),
                           wv.astype(jnp.bfloat16).astype(jnp.float32), 2, 1)
        err = float(jnp.max(jnp.abs(got.astype(jnp.float32) - want)))
        assert err < 5e-2, f"deconv mismatch (Cout={cout}): {err}"

    # 2) Full generator forward via Pallas.
    fwd = jax.jit(generator_forward)
    out = jax.block_until_ready(fwd(params, x))
    assert out.shape == (BATCH, CHANNELS, 512, 512), out.shape
    assert bool(jnp.all(jnp.isfinite(out)))
    assert bool(jnp.all(jnp.abs(out) <= 1.0 + 1e-5))  # tanh range

    # 3) End-to-end check against the pure-JAX reference (bf16-matched weights,
    #    f32 reference activations -> small tolerance for bf16 drift).
    ref = jax.block_until_ready(jax.jit(generator_forward_ref)(params, x))
    diff = jnp.abs(out - ref)
    max_d = float(jnp.max(diff))
    mean_d = float(jnp.mean(diff))
    assert max_d < 0.25 and mean_d < 0.03, (max_d, mean_d)

    print("KERNEL_OK")
</pallas_src>

<mosaic_0001>
module attributes {stable_mosaic.version = 11 : i64} {
  func.func @_deconv_kernel(%arg0: i32, %arg1: i32, %arg2: memref<1x10x10x16xbf16, #tpu.memory_space<vmem>>, %arg3: memref<4x4x16x64xbf16, #tpu.memory_space<vmem>>, %arg4: memref<1x64xf32, #tpu.memory_space<vmem>>, %arg5: memref<1x64xf32, #tpu.memory_space<vmem>>, %arg6: memref<1x8x2x8x128xbf16, #tpu.memory_space<vmem>>) attributes {dimension_semantics = [#tpu.dimension_semantics<parallel>, #tpu.dimension_semantics<parallel>], iteration_bounds = array<i64: 2, 1>, scalar_prefetch = 0 : i64, scratch_operands = 0 : i64, tpu.core_type = #tpu.core_type<tc>, window_params = [{transform_indices = @transform_0, window_bounds = array<i64: 1, 10, 10, 16>}, {pipeline_mode = #tpu.pipeline_mode<synchronous>, transform_indices = @transform_1, window_bounds = array<i64: 4, 4, 16, 64>}, {pipeline_mode = #tpu.pipeline_mode<synchronous>, transform_indices = @transform_2, window_bounds = array<i64: 1, 64>}, {pipeline_mode = #tpu.pipeline_mode<synchronous>, transform_indices = @transform_3, window_bounds = array<i64: 1, 64>}, {transform_indices = @transform_4, window_bounds = array<i64: 1, 8, 2, 8, 128>}]} {
    %c8_i32 = arith.constant 8 : i32
    %0 = arith.muli %arg1, %c8_i32 : i32
    %c0 = arith.constant 0 : index
    %c0_0 = arith.constant 0 : index
    %1 = vector.load %arg4[%c0, %c0_0] : memref<1x64xf32, #tpu.memory_space<vmem>>, vector<1x64xf32>
    %c0_1 = arith.constant 0 : index
    %c0_2 = arith.constant 0 : index
    %2 = vector.load %arg5[%c0_1, %c0_2] : memref<1x64xf32, #tpu.memory_space<vmem>>, vector<1x64xf32>
    %c0_3 = arith.constant 0 : index
    %3 = arith.index_cast %0 : i32 to index
    %c0_4 = arith.constant 0 : index
    %c0_5 = arith.constant 0 : index
    %4 = vector.load %arg2[%c0_3, %3, %c0_4, %c0_5] : memref<1x10x10x16xbf16, #tpu.memory_space<vmem>>, vector<1x10x8x16xbf16>
    %5 = vector.shape_cast %4 : vector<1x10x8x16xbf16> to vector<10x8x16xbf16>
    %6 = vector.extract_strided_slice %5 {offsets = [0, 0, 0], sizes = [8, 8, 16], strides = [1, 1, 1]} : vector<10x8x16xbf16> to vector<8x8x16xbf16>
    %7 = vector.shape_cast %6 : vector<8x8x16xbf16> to vector<64x16xbf16>
    %c3 = arith.constant 3 : index
    %c3_6 = arith.constant 3 : index
    %c0_7 = arith.constant 0 : index
    %c0_8 = arith.constant 0 : index
    %8 = vector.load %arg3[%c3, %c3_6, %c0_7, %c0_8] : memref<4x4x16x64xbf16, #tpu.memory_space<vmem>>, vector<1x1x16x64xbf16>
    %9 = vector.shape_cast %8 : vector<1x1x16x64xbf16> to vector<16x64xbf16>
    %cst = arith.constant dense<0.000000e+00> : vector<64x64xf32>
    %10 = tpu.matmul %7, %9, %cst {dimension_numbers = #tpu.dot_dimension_numbers<[1], [0], [0], [1], [0, 0, 1, 1], [], []>} : vector<64x16xbf16>, vector<16x64xbf16>, vector<64x64xf32> -> vector<64x64xf32>
    %11 = vector.extract_strided_slice %5 {offsets = [1, 0, 0], sizes = [8, 8, 16], strides = [1, 1, 1]} : vector<10x8x16xbf16> to vector<8x8x16xbf16>
    %12 = vector.shape_cast %11 : vector<8x8x16xbf16> to vector<64x16xbf16>
    %c1 = arith.constant 1 : index
    %c3_9 = arith.constant 3 : index
    %c0_10 = arith.constant 0 : index
    %c0_11 = arith.constant 0 : index
    %13 = vector.load %arg3[%c1, %c3_9, %c0_10, %c0_11] : memref<4x4x16x64xbf16, #tpu.memory_space<vmem>>, vector<1x1x16x64xbf16>
    %14 = vector.shape_cast %13 : vector<1x1x16x64xbf16> to vector<16x64xbf16>
    %cst_12 = arith.constant dense<0.000000e+00> : vector<64x64xf32>
    %15 = tpu.matmul %12, %14, %cst_12 {dimension_numbers = #tpu.dot_dimension_numbers<[1], [0], [0], [1], [0, 0, 1, 1], [], []>} : vector<64x16xbf16>, vector<16x64xbf16>, vector<64x64xf32> -> vector<64x64xf32>
    %16 = arith.addf %10, %15 : vector<64x64xf32>
    %c2 = arith.constant 2 : index
    %c3_13 = arith.constant 3 : index
    %c0_14 = arith.constant 0 : index
    %c0_15 = arith.constant 0 : index
    %17 = vector.load %arg3[%c2, %c3_13, %c0_14, %c0_15] : memref<4x4x16x64xbf16, #tpu.memory_space<vmem>>, vector<1x1x16x64xbf16>
    %18 = vector.shape_cast %17 : vector<1x1x16x64xbf16> to vector<16x64xbf16>
    %cst_16 = arith.constant dense<0.000000e+00> : vector<64x64xf32>
    %19 = tpu.matmul %12, %18, %cst_16 {dimension_numbers = #tpu.dot_dimension_numbers<[1], [0], [0], [1], [0, 0, 1, 1], [], []>} : vector<64x16xbf16>, vector<16x64xbf16>, vector<64x64xf32> -> vector<64x64xf32>
    %20 = vector.extract_strided_slice %5 {offsets = [2, 0, 0], sizes = [8, 8, 16], strides = [1, 1, 1]} : vector<10x8x16xbf16> to vector<8x8x16xbf16>
    %21 = vector.shape_cast %20 : vector<8x8x16xbf16> to vector<64x16xbf16>
    %c0_17 = arith.constant 0 : index
    %c3_18 = arith.constant 3 : index
    %c0_19 = arith.constant 0 : index
    %c0_20 = arith.constant 0 : index
    %22 = vector.load %arg3[%c0_17, %c3_18, %c0_19, %c0_20] : memref<4x4x16x64xbf16, #tpu.memory_space<vmem>>, vector<1x1x16x64xbf16>
    %23 = vector.shape_cast %22 : vector<1x1x16x64xbf16> to vector<16x64xbf16>
    %cst_21 = arith.constant dense<0.000000e+00> : vector<64x64xf32>
    %24 = tpu.matmul %21, %23, %cst_21 {dimension_numbers = #tpu.dot_dimension_numbers<[1], [0], [0], [1], [0, 0, 1, 1], [], []>} : vector<64x16xbf16>, vector<16x64xbf16>, vector<64x64xf32> -> vector<64x64xf32>
    %25 = arith.addf %19, %24 : vector<64x64xf32>
    %c0_22 = arith.constant 0 : index
    %26 = arith.index_cast %0 : i32 to index
    %c1_23 = arith.constant 1 : index
    %c0_24 = arith.constant 0 : index
    %27 = vector.load %arg2[%c0_22, %26, %c1_23, %c0_24] : memref<1x10x10x16xbf16, #tpu.memory_space<vmem>>, vector<1x10x8x16xbf16>
    %28 = vector.shape_cast %27 : vector<1x10x8x16xbf16> to vector<10x8x16xbf16>
    %29 = vector.extract_strided_slice %28 {offsets = [0, 0, 0], sizes = [8, 8, 16], strides = [1, 1, 1]} : vector<10x8x16xbf16> to vector<8x8x16xbf16>
    %30 = vector.shape_cast %29 : vector<8x8x16xbf16> to vector<64x16xbf16>
    %c3_25 = arith.constant 3 : index
    %c1_26 = arith.constant 1 : index
    %c0_27 = arith.constant 0 : index
    %c0_28 = arith.constant 0 : index
    %31 = vector.load %arg3[%c3_25, %c1_26, %c0_27, %c0_28] : memref<4x4x16x64xbf16, #tpu.memory_space<vmem>>, vector<1x1x16x64xbf16>
    %32 = vector.shape_cast %31 : vector<1x1x16x64xbf16> to vector<16x64xbf16>
    %cst_29 = arith.constant dense<0.000000e+00> : vector<64x64xf32>
    %33 = tpu.matmul %30, %32, %cst_29 {dimension_numbers = #tpu.dot_dimension_numbers<[1], [0], [0], [1], [0, 0, 1, 1], [], []>} : vector<64x16xbf16>, vector<16x64xbf16>, vector<64x64xf32> -> vector<64x64xf32>
    %34 = arith.addf %16, %33 : vector<64x64xf32>
    %c3_30 = arith.constant 3 : index
    %c2_31 = arith.constant 2 : index
    %c0_32 = arith.constant 0 : index
    %c0_33 = arith.constant 0 : index
    %35 = vector.load %arg3[%c3_30, %c2_31, %c0_32, %c0_33] : memref<4x4x16x64xbf16, #tpu.memory_space<vmem>>, vector<1x1x16x64xbf16>
    %36 = vector.shape_cast %35 : vector<1x1x16x64xbf16> to vector<16x64xbf16>
    %cst_34 = arith.constant dense<0.000000e+00> : vector<64x64xf32>
    %37 = tpu.matmul %30, %36, %cst_34 {dimension_numbers = #tpu.dot_dimension_numbers<[1], [0], [0], [1], [0, 0, 1, 1], [], []>} : vector<64x16xbf16>, vector<16x64xbf16>, vector<64x64xf32> -> vector<64x64xf32>
    %38 = vector.extract_strided_slice %28 {offsets = [1, 0, 0], sizes = [8, 8, 16], strides = [1, 1, 1]} : vector<10x8x16xbf16> to vector<8x8x16xbf16>
    %39 = vector.shape_cast %38 : vector<8x8x16xbf16> to vector<64x16xbf16>
    %c1_35 = arith.constant 1 : index
    %c1_36 = arith.constant 1 : index
    %c0_37 = arith.constant 0 : index
    %c0_38 = arith.constant 0 : index
    %40 = vector.load %arg3[%c1_35, %c1_36, %c0_37, %c0_38] : memref<4x4x16x64xbf16, #tpu.memory_space<vmem>>, vector<1x1x16x64xbf16>
    %41 = vector.shape_cast %40 : vector<1x1x16x64xbf16> to vector<16x64xbf16>
    %cst_39 = arith.constant dense<0.000000e+00> : vector<64x64xf32>
    %42 = tpu.matmul %39, %41, %cst_39 {dimension_numbers = #tpu.dot_dimension_numbers<[1], [0], [0], [1], [0, 0, 1, 1], [], []>} : vector<64x16xbf16>, vector<16x64xbf16>, vector<64x64xf32> -> vector<64x64xf32>
    %43 = arith.addf %34, %42 : vector<64x64xf32>
    %c1_40 = arith.constant 1 : index
    %c2_41 = arith.constant 2 : index
    %c0_42 = arith.constant 0 : index
    %c0_43 = arith.constant 0 : index
    %44 = vector.load %arg3[%c1_40, %c2_41, %c0_42, %c0_43] : memref<4x4x16x64xbf16, #tpu.memory_space<vmem>>, vector<1x1x16x64xbf16>
    %45 = vector.shape_cast %44 : vector<1x1x16x64xbf16> to vector<16x64xbf16>
    %cst_44 = arith.constant dense<0.000000e+00> : vector<64x64xf32>
    %46 = tpu.matmul %39, %45, %cst_44 {dimension_numbers = #tpu.dot_dimension_numbers<[1], [0], [0], [1], [0, 0, 1, 1], [], []>} : vector<64x16xbf16>, vector<16x64xbf16>, vector<64x64xf32> -> vector<64x64xf32>
    %47 = arith.addf %37, %46 : vector<64x64xf32>
    %c2_45 = arith.constant 2 : index
    %c1_46 = arith.constant 1 : index
    %c0_47 = arith.constant 0 : index
    %c0_48 = arith.constant 0 : index
    %48 = vector.load %arg3[%c2_45, %c1_46, %c0_47, %c0_48] : memref<4x4x16x64xbf16, #tpu.memory_space<vmem>>, vector<1x1x16x64xbf16>
    %49 = vector.shape_cast %48 : vector<1x1x16x64xbf16> to vector<16x64xbf16>
    %cst_49 = arith.constant dense<0.000000e+00> : vector<64x64xf32>
    %50 = tpu.matmul %39, %49, %cst_49 {dimension_numbers = #tpu.dot_dimension_numbers<[1], [0], [0], [1], [0, 0, 1, 1], [], []>} : vector<64x16xbf16>, vector<16x64xbf16>, vector<64x64xf32> -> vector<64x64xf32>
    %51 = arith.addf %25, %50 : vector<64x64xf32>
    %c2_50 = arith.constant 2 : index
    %c2_51 = arith.constant 2 : index
    %c0_52 = arith.constant 0 : index
    %c0_53 = arith.constant 0 : index
    %52 = vector.load %arg3[%c2_50, %c2_51, %c0_52, %c0_53] : memref<4x4x16x64xbf16, #tpu.memory_space<vmem>>, vector<1x1x16x64xbf16>
    %53 = vector.shape_cast %52 : vector<1x1x16x64xbf16> to vector<16x64xbf16>
    %cst_54 = arith.constant dense<0.000000e+00> : vector<64x64xf32>
    %54 = tpu.matmul %39, %53, %cst_54 {dimension_numbers = #tpu.dot_dimension_numbers<[1], [0], [0], [1], [0, 0, 1, 1], [], []>} : vector<64x16xbf16>, vector<16x64xbf16>, vector<64x64xf32> -> vector<64x64xf32>
    %55 = vector.extract_strided_slice %28 {offsets = [2, 0, 0], sizes = [8, 8, 16], strides = [1, 1, 1]} : vector<10x8x16xbf16> to vector<8x8x16xbf16>
    %56 = vector.shape_cast %55 : vector<8x8x16xbf16> to vector<64x16xbf16>
    %c0_55 = arith.constant 0 : index
    %c1_56 = arith.constant 1 : index
    %c0_57 = arith.constant 0 : index
    %c0_58 = arith.constant 0 : index
    %57 = vector.load %arg3[%c0_55, %c1_56, %c0_57, %c0_58] : memref<4x4x16x64xbf16, #tpu.memory_space<vmem>>, vector<1x1x16x64xbf16>
    %58 = vector.shape_cast %57 : vector<1x1x16x64xbf16> to vector<16x64xbf16>
    %cst_59 = arith.constant dense<0.000000e+00> : vector<64x64xf32>
    %59 = tpu.matmul %56, %58, %cst_59 {dimension_numbers = #tpu.dot_dimension_numbers<[1], [0], [0], [1], [0, 0, 1, 1], [], []>} : vector<64x16xbf16>, vector<16x64xbf16>, vector<64x64xf32> -> vector<64x64xf32>
    %60 = arith.addf %51, %59 : vector<64x64xf32>
    %c0_60 = arith.constant 0 : index
    %c2_61 = arith.constant 2 : index
    %c0_62 = arith.constant 0 : index
    %c0_63 = arith.constant 0 : index
    %61 = vector.load %arg3[%c0_60, %c2_61, %c0_62, %c0_63] : memref<4x4x16x64xbf16, #tpu.memory_space<vmem>>, vector<1x1x16x64xbf16>
    %62 = vector.shape_cast %61 : vector<1x1x16x64xbf16> to vector<16x64xbf16>
    %cst_64 = arith.constant dense<0.000000e+00> : vector<64x64xf32>
    %63 = tpu.matmul %56, %62, %cst_64 {dimension_numbers = #tpu.dot_dimension_numbers<[1], [0], [0], [1], [0, 0, 1, 1], [], []>} : vector<64x16xbf16>, vector<16x64xbf16>, vector<64x64xf32> -> vector<64x64xf32>
    %64 = arith.addf %54, %63 : vector<64x64xf32>
    %c0_65 = arith.constant 0 : index
    %65 = arith.index_cast %0 : i32 to index
    %c2_66 = arith.constant 2 : index
    %c0_67 = arith.constant 0 : index
    %66 = vector.load %arg2[%c0_65, %65, %c2_66, %c0_67] : memref<1x10x10x16xbf16, #tpu.memory_space<vmem>>, vector<1x10x8x16xbf16>
    %67 = vector.shape_cast %66 : vector<1x10x8x16xbf16> to vector<10x8x16xbf16>
    %68 = vector.extract_strided_slice %67 {offsets = [0, 0, 0], sizes = [8, 8, 16], strides = [1, 1, 1]} : vector<10x8x16xbf16> to vector<8x8x16xbf16>
    %69 = vector.shape_cast %68 : vector<8x8x16xbf16> to vector<64x16xbf16>
    %c3_68 = arith.constant 3 : index
    %c0_69 = arith.constant 0 : index
    %c0_70 = arith.constant 0 : index
    %c0_71 = arith.constant 0 : index
    %70 = vector.load %arg3[%c3_68, %c0_69, %c0_70, %c0_71] : memref<4x4x16x64xbf16, #tpu.memory_space<vmem>>, vector<1x1x16x64xbf16>
    %71 = vector.shape_cast %70 : vector<1x1x16x64xbf16> to vector<16x64xbf16>
    %cst_72 = arith.constant dense<0.000000e+00> : vector<64x64xf32>
    %72 = tpu.matmul %69, %71, %cst_72 {dimension_numbers = #tpu.dot_dimension_numbers<[1], [0], [0], [1], [0, 0, 1, 1], [], []>} : vector<64x16xbf16>, vector<16x64xbf16>, vector<64x64xf32> -> vector<64x64xf32>
    %73 = arith.addf %47, %72 : vector<64x64xf32>
    %74 = vector.extract_strided_slice %67 {offsets = [1, 0, 0], sizes = [8, 8, 16], strides = [1, 1, 1]} : vector<10x8x16xbf16> to vector<8x8x16xbf16>
    %75 = vector.shape_cast %74 : vector<8x8x16xbf16> to vector<64x16xbf16>
    %c1_73 = arith.constant 1 : index
    %c0_74 = arith.constant 0 : index
    %c0_75 = arith.constant 0 : index
    %c0_76 = arith.constant 0 : index
    %76 = vector.load %arg3[%c1_73, %c0_74, %c0_75, %c0_76] : memref<4x4x16x64xbf16, #tpu.memory_space<vmem>>, vector<1x1x16x64xbf16>
    %77 = vector.shape_cast %76 : vector<1x1x16x64xbf16> to vector<16x64xbf16>
    %cst_77 = arith.constant dense<0.000000e+00> : vector<64x64xf32>
    %78 = tpu.matmul %75, %77, %cst_77 {dimension_numbers = #tpu.dot_dimension_numbers<[1], [0], [0], [1], [0, 0, 1, 1], [], []>} : vector<64x16xbf16>, vector<16x64xbf16>, vector<64x64xf32> -> vector<64x64xf32>
    %79 = arith.addf %73, %78 : vector<64x64xf32>
    %c2_78 = arith.constant 2 : index
    %c0_79 = arith.constant 0 : index
    %c0_80 = arith.constant 0 : index
    %c0_81 = arith.constant 0 : index
    %80 = vector.load %arg3[%c2_78, %c0_79, %c0_80, %c0_81] : memref<4x4x16x64xbf16, #tpu.memory_space<vmem>>, vector<1x1x16x64xbf16>
    %81 = vector.shape_cast %80 : vector<1x1x16x64xbf16> to vector<16x64xbf16>
    %cst_82 = arith.constant dense<0.000000e+00> : vector<64x64xf32>
    %82 = tpu.matmul %75, %81, %cst_82 {dimension_numbers = #tpu.dot_dimension_numbers<[1], [0], [0], [1], [0, 0, 1, 1], [], []>} : vector<64x16xbf16>, vector<16x64xbf16>, vector<64x64xf32> -> vector<64x64xf32>
    %83 = arith.addf %64, %82 : vector<64x64xf32>
    %84 = vector.extract_strided_slice %67 {offsets = [2, 0, 0], sizes = [8, 8, 16], strides = [1, 1, 1]} : vector<10x8x16xbf16> to vector<8x8x16xbf16>
    %85 = vector.shape_cast %84 : vector<8x8x16xbf16> to vector<64x16xbf16>
    %c0_83 = arith.constant 0 : index
    %c0_84 = arith.constant 0 : index
    %c0_85 = arith.constant 0 : index
    %c0_86 = arith.constant 0 : index
    %86 = vector.load %arg3[%c0_83, %c0_84, %c0_85, %c0_86] : memref<4x4x16x64xbf16, #tpu.memory_space<vmem>>, vector<1x1x16x64xbf16>
    %87 = vector.shape_cast %86 : vector<1x1x16x64xbf16> to vector<16x64xbf16>
    %cst_87 = arith.constant dense<0.000000e+00> : vector<64x64xf32>
    %88 = tpu.matmul %85, %87, %cst_87 {dimension_numbers = #tpu.dot_dimension_numbers<[1], [0], [0], [1], [0, 0, 1, 1], [], []>} : vector<64x16xbf16>, vector<16x64xbf16>, vector<64x64xf32> -> vector<64x64xf32>
    %89 = arith.addf %83, %88 : vector<64x64xf32>
    %90 = vector.broadcast %1 : vector<1x64xf32> to vector<64x64xf32>
    %91 = arith.mulf %43, %90 : vector<64x64xf32>
    %92 = vector.broadcast %2 : vector<1x64xf32> to vector<64x64xf32>
    %93 = arith.addf %91, %92 : vector<64x64xf32>
    %94 = arith.truncf %93 : vector<64x64xf32> to vector<64x64xbf16>
    %95 = vector.shape_cast %94 : vector<64x64xbf16> to vector<8x8x64xbf16>
    %c0_88 = arith.constant 0 : index
    %c0_89 = arith.constant 0 : index
    %c0_90 = arith.constant 0 : index
    %c0_91 = arith.constant 0 : index
    %c0_92 = arith.constant 0 : index
    %96 = vector.load %arg6[%c0_88, %c0_89, %c0_90, %c0_91, %c0_92] : memref<1x8x2x8x128xbf16, #tpu.memory_space<vmem>>, vector<1x8x1x8x64xbf16>
    %97 = vector.shape_cast %96 : vector<1x8x1x8x64xbf16> to vector<8x8x64xbf16>
    %98 = vector.shape_cast %95 : vector<8x8x64xbf16> to vector<1x8x1x8x64xbf16>
    tpu.vector_store %arg6[%c0_88, %c0_89, %c0_90, %c0_91, %c0_92], %98 {strides = array<i32>} : memref<1x8x2x8x128xbf16, #tpu.memory_space<vmem>>, vector<1x8x1x8x64xbf16>,
    %99 = vector.broadcast %1 : vector<1x64xf32> to vector<64x64xf32>
    %100 = arith.mulf %79, %99 : vector<64x64xf32>
    %101 = vector.broadcast %2 : vector<1x64xf32> to vector<64x64xf32>
    %102 = arith.addf %100, %101 : vector<64x64xf32>
    %103 = arith.truncf %102 : vector<64x64xf32> to vector<64x64xbf16>
    %104 = vector.shape_cast %103 : vector<64x64xbf16> to vector<8x8x64xbf16>
    %c0_93 = arith.constant 0 : index
    %c0_94 = arith.constant 0 : index
    %c0_95 = arith.constant 0 : index
    %c0_96 = arith.constant 0 : index
    %c64 = arith.constant 64 : index
    %105 = vector.load %arg6[%c0_93, %c0_94, %c0_95, %c0_96, %c64] : memref<1x8x2x8x128xbf16, #tpu.memory_space<vmem>>, vector<1x8x1x8x64xbf16>
    %106 = vector.shape_cast %105 : vector<1x8x1x8x64xbf16> to vector<8x8x64xbf16>
    %107 = vector.shape_cast %104 : vector<8x8x64xbf16> to vector<1x8x1x8x64xbf16>
    tpu.vector_store %arg6[%c0_93, %c0_94, %c0_95, %c0_96, %c64], %107 {strides = array<i32>} : memref<1x8x2x8x128xbf16, #tpu.memory_space<vmem>>, vector<1x8x1x8x64xbf16>,
    %108 = vector.broadcast %1 : vector<1x64xf32> to vector<64x64xf32>
    %109 = arith.mulf %60, %108 : vector<64x64xf32>
    %110 = vector.broadcast %2 : vector<1x64xf32> to vector<64x64xf32>
    %111 = arith.addf %109, %110 : vector<64x64xf32>
    %112 = arith.truncf %111 : vector<64x64xf32> to vector<64x64xbf16>
    %113 = vector.shape_cast %112 : vector<64x64xbf16> to vector<8x8x64xbf16>
    %c0_97 = arith.constant 0 : index
    %c0_98 = arith.constant 0 : index
    %c1_99 = arith.constant 1 : index
    %c0_100 = arith.constant 0 : index
    %c0_101 = arith.constant 0 : index
    %114 = vector.load %arg6[%c0_97, %c0_98, %c1_99, %c0_100, %c0_101] : memref<1x8x2x8x128xbf16, #tpu.memory_space<vmem>>, vector<1x8x1x8x64xbf16>
    %115 = vector.shape_cast %114 : vector<1x8x1x8x64xbf16> to vector<8x8x64xbf16>
    %116 = vector.shape_cast %113 : vector<8x8x64xbf16> to vector<1x8x1x8x64xbf16>
    tpu.vector_store %arg6[%c0_97, %c0_98, %c1_99, %c0_100, %c0_101], %116 {strides = array<i32>} : memref<1x8x2x8x128xbf16, #tpu.memory_space<vmem>>, vector<1x8x1x8x64xbf16>,
    %117 = vector.broadcast %1 : vector<1x64xf32> to vector<64x64xf32>
    %118 = arith.mulf %89, %117 : vector<64x64xf32>
    %119 = vector.broadcast %2 : vector<1x64xf32> to vector<64x64xf32>
    %120 = arith.addf %118, %119 : vector<64x64xf32>
    %121 = arith.truncf %120 : vector<64x64xf32> to vector<64x64xbf16>
    %122 = vector.shape_cast %121 : vector<64x64xbf16> to vector<8x8x64xbf16>
    %c0_102 = arith.constant 0 : index
    %c0_103 = arith.constant 0 : index
    %c1_104 = arith.constant 1 : index
    %c0_105 = arith.constant 0 : index
    %c64_106 = arith.constant 64 : index
    %123 = vector.load %arg6[%c0_102, %c0_103, %c1_104, %c0_105, %c64_106] : memref<1x8x2x8x128xbf16, #tpu.memory_space<vmem>>, vector<1x8x1x8x64xbf16>
    %124 = vector.shape_cast %123 : vector<1x8x1x8x64xbf16> to vector<8x8x64xbf16>
    %125 = vector.shape_cast %122 : vector<8x8x64xbf16> to vector<1x8x1x8x64xbf16>
    tpu.vector_store %arg6[%c0_102, %c0_103, %c1_104, %c0_105, %c64_106], %125 {strides = array<i32>} : memref<1x8x2x8x128xbf16, #tpu.memory_space<vmem>>, vector<1x8x1x8x64xbf16>,
    return
  }
  func.func @transform_0(%arg0: i32, %arg1: i32) -> (i32, i32, i32, i32) {
    %c0_i32 = arith.constant 0 : i32
    %c0_i32_0 = arith.constant 0 : i32
    %c0_i32_1 = arith.constant 0 : i32
    %c0_i32_2 = arith.constant 0 : i32
    return %arg0, %c0_i32, %c0_i32_0, %c0_i32_1 : i32, i32, i32, i32
  }
  func.func @transform_1(%arg0: i32, %arg1: i32) -> (i32, i32, i32, i32) {
    %c0_i32 = arith.constant 0 : i32
    %c0_i32_0 = arith.constant 0 : i32
    %c0_i32_1 = arith.constant 0 : i32
    %c0_i32_2 = arith.constant 0 : i32
    %c0_i32_3 = arith.constant 0 : i32
    return %c0_i32, %c0_i32_0, %c0_i32_1, %c0_i32_2 : i32, i32, i32, i32
  }
  func.func @transform_2(%arg0: i32, %arg1: i32) -> (i32, i32) {
    %c0_i32 = arith.constant 0 : i32
    %c0_i32_0 = arith.constant 0 : i32
    %c0_i32_1 = arith.constant 0 : i32
    return %c0_i32, %c0_i32_0 : i32, i32
  }
  func.func @transform_3(%arg0: i32, %arg1: i32) -> (i32, i32) {
    %c0_i32 = arith.constant 0 : i32
    %c0_i32_0 = arith.constant 0 : i32
    %c0_i32_1 = arith.constant 0 : i32
    return %c0_i32, %c0_i32_0 : i32, i32
  }
  func.func @transform_4(%arg0: i32, %arg1: i32) -> (i32, i32, i32, i32, i32) {
    %c0_i32 = arith.constant 0 : i32
    %c0_i32_0 = arith.constant 0 : i32
    %c0_i32_1 = arith.constant 0 : i32
    %c0_i32_2 = arith.constant 0 : i32
    return %arg0, %arg1, %c0_i32, %c0_i32_0, %c0_i32_1 : i32, i32, i32, i32, i32
  }
}

</mosaic_0001>

<bundles_post_ra>
// kernel: tpu_custom_call.1
= control target key start
LH: loop header
LB: loop body
LE: loop exit
PB: predicated region body
PF: predicated region fallthrough
CT: control target
= control target key end

     0   :  { %9 = vsyncpa [#allocation3], 0  ;;  %s3646_s0 = inlined_call_operand.vmem [shape: bf16[2,10,10,16], index: 0, kind: input, shape index: {}]   ;;  %s3647_s1 = inlined_call_operand.vmem [shape: bf16[4,4,16,64], index: 1, kind: input, shape index: {}]   ;;  %s3648_s2 = inlined_call_operand.vmem [shape: f32[1,64], index: 2, kind: input, shape index: {}]   ;;  %s3649_s3 = inlined_call_operand.vmem [shape: f32[1,64], index: 3, kind: input, shape index: {}]   ;;  %s3650_s4 = inlined_call_operand.hbm [shape: bf16[2,8,2,8,128], index: 4, kind: output, shape index: {}]  }
   0x1   :  { %11 = vsyncpa [#allocation3 + $0x1], 0  ;;  %s2992_s15 = smov 0   ;;  %s2994_s16 = smov 0  }
   0x2   :  { %s2996_s17 = smov 0   ;;  %s2998_s18 = smov 0  }
   0x3   :  { %s3000_s19 = smov 0   ;;  %s3002_s20 = smov 0  }
   0x4 LB: > { %s2223_s21 = sadd.s32 4294967295, %s2962_s20   ;;  %s2224_s22 = sadd.s32 4294967294, %s2962_s20   ;;  %s2962_s20 = sphi %s3002_s20, %s17_s20   ;;  %s2958_s19 = sphi %s3000_s19, %s3661_s19   ;;  %s2954_s18 = sphi %s2998_s18, %s3660_s18   ;;  %s2950_s17 = sphi %s2996_s17, %s3659_s17   ;;  %s2946_s16 = sphi %s2994_s16, %s3658_s16   ;;  %s2942_s15 = sphi %s2992_s15, %s3657_s15  }
   0x5   : > { %s29_s23 = sadd.s32 1, %s2958_s19  ;;  %s127_s24 = sadd.s32 1, %s2950_s17 }
   0x6   : > { %p31_p0 = scmp.ge.s32.totalorder %s29_s23, 2  ;;  %p137_p1 = scmp.ne.s32.totalorder %s2950_s17, %s2946_s16 }
   0x7   : > { %p138_p2 = scmp.eq.s32.totalorder %s2223_s21, 1  ;;  %p143_p3 = scmp.ne.s32.totalorder %s2946_s16, %s2942_s15 }
   0x8   : > { %s3663_s23 = smov (%p31_p0, %s29_s23), 0  ;;  %p144_p5 = scmp.eq.s32.totalorder %s2224_s22, 1 }
   0x9   : > { %p3032_p4 = por %p138_p2, %p137_p1  ;;  %s122_s26 = ssub.s32 %s2958_s19, %s3663_s23 }
   0xa   : > { %p2227_p6 = scmp.ge.s32.totalorder %s2962_s20, 1  ;;  %p125_p7 = scmp.eq.s32.totalorder %s122_s26, 0 }
   0xb   : > { %p3039_p8 = por %p144_p5, %p143_p3  ;;  %p179_p9 = scmp.lt.s32.totalorder %s2962_s20, 3 }
   0xc   : > { %s3045_s28 = scalar_select %p125_p7, %s2950_s17, %s127_s24  }
   0xd   : > { %p180_p10 = pnand %p2227_p6, %p179_p9 }
   0xe   : > { %v2859_v0 = vld [vmem:[%s3647_s1 + $0x38] sm:$0xff] (!%p180_p10)   ;;  %p205_p11 = scmp.lt.s32.totalorder (!%p180_p10), %s2954_s18, 1  ;;  %vm260_vm0 = vcmask (!%p180_p10), 130048   ;;  %v3079_v10 = vld [vmem:[%s3647_s1 + $0x68] sm:$0xff] (!%p180_p10)   ;;  %v3092_v16 = vld [vmem:[%s3647_s1 + $0x30] sm:$0xff] (!%p180_p10)   ;;  %vm1440_vm4 = vcmask (!%p180_p10), 1042432  }
   0xf   : > { %183 = sbr.rel (%p180_p10) target bundleno = 519 (0x207), region = 36  ;;  %v2860_v1 = vld [vmem:[%s3647_s1 + $0x18] sm:$0xff] (!%p180_p10)   ;;  %2545 = vmatprep.subr.bf16.mxu0 (!%p180_p10), %v2859_v0  ;;  %vm601_vm1 = vsmask.f32 (!%p180_p10), 3328  ;;  %vm602_vm2 = vsmask.f32 (!%p180_p10), 7440 }
  0x10   : > { %v2863_v2 = vld [vmem:[%s3647_s1 + $0x78] sm:$0xff] (!%p180_p10)   ;;  %2565 = vmatprep.subr.bf16.mxu1 (!%p180_p10), %v2860_v1  ;;  %2546 = vmatpush3.bf16.msra.mxu0 (!%p180_p10), %v2859_v0  ;;  %vm3155_vm3 = vmor (!%p180_p10), %vm601_vm1, %vm602_vm2  ;;  %vm1441_vm5 = vcmask (!%p180_p10), 1046532   ;;  %s202_s10 = sand.u32 (!%p180_p10), 1, %s2946_s16   ;;  %vm1920_vm7 = vcmask (!%p180_p10), 519168   ;;  %s2964_s22 = smov (!%p180_p10), 64   ;;  %vm1993_vm8 = vcmask (!%p180_p10), 1043968  }
  0x11   : > { %v2867_v3 = vld [vmem:[%s3647_s1 + $0x58] sm:$0xff] (!%p180_p10)   ;;  %2566 = vmatpush3.bf16.msra.mxu1 (!%p180_p10), %v2860_v1  ;;  %2555 = vmatprep.subr.bf16.mxu0 (!%p180_p10), %v2863_v2  ;;  %vm3217_vm6 = vmor (!%p180_p10), %vm1440_vm4, %vm1441_vm5  ;;  %s2228_s13 = sshll.u32 (!%p180_p10), %s202_s10, 6  ;;  %s2965_s6 = smov (!%p180_p10), [#allocation2]  }
  0x12   : > { %2575 = vmatprep.subr.bf16.mxu1 (!%p180_p10), %v2867_v3  ;;  %s3449_s14 = scalar_lea.vmem (!%p180_p10), [#allocation2], %s2228_s13 }
  0x13   : > { %s2148_s24 = sshll.u32 (!%p180_p10), %s3449_s14, 4  ;;  %s3590_s24 = int_to_ptr.vmem [resolvable:$true] %s2148_s24 }
  0x14   : > { %s2884_s5 = scalar_lea.vmem (!%p180_p10), %s3590_s24, 1024 }
  0x15   : > { %p2885_p12 = scmp.ne.s32.totalorder (!%p180_p10), %s3590_s24, %s2884_s5 }
  0x16   : > { %s206_s7 = scalar_select %p205_p11, %s2954_s18, 1 }
  0x17   : > { %p2886_p13 = pnand %p2885_p12, %p3032_p4 }
  0x18   : > { %s2801_s12 = smul.u32 80, %s206_s7  ;;  %s2888_s7 = sshll.u32 %s2965_s6, 4  ;;  %s2889_s7 = int_to_ptr.vmem [resolvable:$false] %s2888_s7 }
  0x19   : > { %p2887_p0 = pneg %p2886_p13  ;;  %s2890_s8 = scalar_lea.vmem %s2889_s7, 2048 }
  0x1a   : > { %s3064_s21 = scalar_lea.vmem %s3646_s0, %s2801_s12  ;;  %p2891_p1 = scmp.lt.s32.totalorder %s3590_s24, %s2889_s7 }
  0x1b   : > { %v3067_v4 = vld [vmem:[%s3064_s21 + $0x8] sm:$0xf]  ;;  %v220_v5 = vld [vmem:[%s3064_s21 + $0x10] sm:$0xf]  ;;  %v221_v7 = vld [vmem:[%s3064_s21 + $0x18] sm:$0xf]  ;;  %p2892_p2 = scmp.lt.s32.totalorder %s2890_s8, %s2884_s5 }
  0x1c   : > { %v3071_v6 = vcombine.low %v3067_v4, %v220_v5  ;;  %v222_v8 = vld [vmem:[%s3064_s21 + $0x20] sm:$0xf]  ;;  %v223_v9 = vld [vmem:[%s3064_s21 + $0x28] sm:$0xf]  ;;  %v3083_v12 = vcombine.low %v220_v5, %v221_v7  ;;  %v224_v14 = vld [vmem:[%s3064_s21 + $0x30] sm:$0xf] }
  0x1d   : > { %v3081_v11 = vcombine.low %v221_v7, %v222_v8  ;;  %v3085_v13 = vcombine.low %v222_v8, %v223_v9  ;;  %v225_v15 = vld [vmem:[%s3064_s21 + $0x38] sm:$0xf]  ;;  %v218_v17 = vld [vmem:[%s3064_s21] sm:$0xf]  ;;  %v3097_v18 = vcombine.low %v223_v9, %v224_v14  ;;  %v3108_v22 = vld [vmem:[%s3064_s21 + $0x4] sm:$0x1]  ;;  %p2893_p3 = por %p2892_p2, %p2891_p1 }
  0x1e   : > { %2547 = vmatprep.mubr.msk.bf16.mxu0 %vm260_vm0, %v3071_v6  ;;  %v3099_v19 = vcombine.low %v224_v14, %v225_v15  ;;  %v226_v20 = vld [vmem:[%s3064_s21 + $0x40] sm:$0xf]  ;;  %2567 = vmatprep.mubr.msk.bf16.mxu1 %vm260_vm0, %v3083_v12  ;;  %v583_v23 = vld [vmem:[%s3064_s21 + $0x8] sm:$0xf]  ;;  %v3117_v29 = vld [vmem:[%s3064_s21 + $0xc] sm:$0x1]  ;;  %v2243_v36 = vcombine.low %v218_v17, %v3067_v4 }
  0x1f   : > { %v581_v21 = vld [vmem:[%s3064_s21] sm:$0xf]  ;;  %2548 = vmatmul.mubr.msk.bf16.vlgmr.msra.gmra.mrb[0].mxu0 %vm260_vm0, %v3081_v11  ;;  %2568 = vmatmul.mubr.msk.bf16.vlgmr.msra.gmra.mrb[0].mxu1 %vm260_vm0, %v3085_v13  ;;  %v227_v26 = vld [vmem:[%s3064_s21 + $0x48] sm:$0xf]  ;;  %v619_v27 = vshrl.u32 %v583_v23, 16  ;;  %v622_v28 = vshll.u32 %v583_v23, 16  ;;  %v3125_v37 = vcombine.low %v225_v15, %v226_v20  ;;  %p2894_p5 = pnand %p2893_p3, %p2887_p0 }
  0x20   : > { %v605_v24 = vshrl.u32 %v581_v21, 16  ;;  %v608_v25 = vshll.u32 %v581_v21, 16  ;;  %2556 = vmatpush3.bf16.msra.mxu0 %v2863_v2  ;;  %2576 = vmatpush3.bf16.msra.mxu1 %v2867_v3  ;;  %v585_v32 = vld [vmem:[%s3064_s21 + $0x10] sm:$0xf]  ;;  %v614_v33 = vshll.u32 %v3108_v22, 16  ;;  %v2256_v38 = vcombine.low %v226_v20, %v227_v26  ;;  %v3167_v21 = vld [vmem:[%s3647_s1 + $0x28] sm:$0xff]  }
  0x21   : > { %2551 = vmatprep.mubr.msk.bf16.mxu0 %vm260_vm0, %v3097_v18  ;;  %2571 = vmatprep.mubr.msk.bf16.mxu1 %vm260_vm0, %v3099_v19  ;;  %v621_v34 = vrot.slane %v619_v27, 4  ;;  %v624_v35 = vrot.slane %v622_v28, 5  ;;  %v3129_v39 = vld [vmem:[%s3064_s21 + $0x14] sm:$0x1]  ;;  %v587_v40 = vld [vmem:[%s3064_s21 + $0x18] sm:$0xf] }
  0x22   : > { %v607_v30 = vrot.slane %v605_v24, 4  ;;  %v610_v31 = vrot.slane %v608_v25, 5  ;;  %2585 = vmatprep.subr.bf16.mxu0 %v3079_v10  ;;  %2605 = vmatprep.subr.bf16.mxu1 %v3092_v16  ;;  %v3133_v41 = vld [vmem:[%s3064_s21 + $0x1c] sm:$0x1]  ;;  %v628_v43 = vshll.u32 %v3117_v29, 16  ;;  %v633_v44 = vshrl.u32 %v585_v32, 16 }
  0x23   : > { %v636_v45 = vshll.u32 %v585_v32, 16  ;;  %v625_v46 = vor.u32 %v624_v35, %v621_v34  ;;  %v589_v47 = vld [vmem:[%s3064_s21 + $0x20] sm:$0xf]  ;;  %v647_v48 = vshrl.u32 %v587_v40, 16  ;;  %v650_v49 = vshll.u32 %v587_v40, 16 }
  0x24   : > { %v611_v42 = vor.u32 %v610_v31, %v607_v30  ;;  %v635_v50 = vrot.slane %v633_v44, 4  ;;  %v642_v52 = vshll.u32 %v3129_v39, 16  ;;  %v656_v53 = vshll.u32 %v3133_v41, 16  ;;  %v591_v55 = vld [vmem:[%s3064_s21 + $0x28] sm:$0xf]  ;;  %v2882_v8 = vld [vmem:[%s3647_s1 + $0x20] sm:$0xff]  }
  0x25   : > { %v638_v51 = vrot.slane %v636_v45, 5  ;;  %v616_v54 = vrot.slane %v614_v33, 5  ;;  %v630_v57 = vrot.slane %v628_v43, 5  ;;  %v3145_v58 = vld [vmem:[%s3064_s21 + $0x24] sm:$0x1]  ;;  %v661_v59 = vshrl.u32 %v589_v47, 16 }
  0x26   : > { %v612_v56 = vrot.slane %v611_v42, 4  ;;  %v664_v60 = vshll.u32 %v589_v47, 16  ;;  %v649_v62 = vrot.slane %v647_v48, 4  ;;  %v652_v63 = vrot.slane %v650_v49, 5  ;;  %v593_v1 = vld [vmem:[%s3064_s21 + $0x30] sm:$0xf] }
  0x27   : > { %2552 = vmatmul.mubr.msk.bf16.gmra.mrb[4].mxu0 %vm260_vm0, %v3125_v37  ;;  %2572 = vmatmul.mubr.msk.bf16.gmra.mrb[4].mxu1 %vm260_vm0, %v2256_v38  ;;  %v639_v61 = vor.u32 %v638_v51, %v635_v50  ;;  %v675_v0 = vshrl.u32 %v591_v55, 16  ;;  %v626_v2 = vrot.slane %v625_v46, 4  ;;  %v644_v3 = vrot.slane %v642_v52, 5  ;;  %v3151_v5 = vld [vmem:[%s3064_s21 + $0x2c] sm:$0x1] }
  0x28   : > { %2557 = vmatprep.mubr.msk.bf16.mxu0 %vm260_vm0, %v2243_v36  ;;  %2577 = vmatprep.mubr.msk.bf16.mxu1 %vm260_vm0, %v3071_v6  ;;  %v658_v4 = vrot.slane %v656_v53, 5  ;;  %v678_v7 = vshll.u32 %v591_v55, 16  ;;  %v663_v6 = vrot.slane %v661_v59, 4  ;;  %v666_v9 = vrot.slane %v664_v60, 5  ;;  %v3161_v17 = vld [vmem:[%s3064_s21 + $0x34] sm:$0x1] }
  0x29   : > { %v670_v14 = vshll.u32 %v3145_v58, 16  ;;  %v677_v15 = vrot.slane %v675_v0, 4  ;;  %v595_v20 = vld [vmem:[%s3064_s21 + $0x38] sm:$0xf]  ;;  %v689_v24 = vshrl.u32 %v593_v1, 16  ;;  %v640_v26 = vrot.slane %v639_v61, 4 }
  0x2a   : > { %v680_v23 = vrot.slane %v678_v7, 5  ;;  %v597_v25 = vld [vmem:[%s3064_s21 + $0x40] sm:$0xf]  ;;  %v653_v27 = vor.u32 %v652_v63, %v649_v62  ;;  %v692_v28 = vshll.u32 %v593_v1, 16  ;;  %v3171_v30 = vld [vmem:[%s3064_s21 + $0x3c] sm:$0x1]  ;;  %v617_v31 = vsel %vm3155_vm3, %v612_v56, %v616_v54 }
  0x2b   : > { %v631_v32 = vsel %vm3155_vm3, %v626_v2, %v630_v57  ;;  %v684_v33 = vshll.u32 %v3151_v5, 16  ;;  %v691_v34 = vrot.slane %v689_v24, 4  ;;  %v667_v35 = vor.u32 %v666_v9, %v663_v6  ;;  %v3183_v36 = vld [vmem:[%s3647_s1 + $0x70] sm:$0xff]   ;;  %v3190_v45 = vld [vmem:[%s3064_s21 + $0x44] sm:$0x1]  ;;  %v2878_v6 = vld [vmem:[%s3647_s1 + $0x8] sm:$0xff]  }
  0x2c   : > { %v694_v38 = vrot.slane %v692_v28, 5  ;;  %v703_v40 = vshrl.u32 %v595_v20, 16  ;;  %v706_v42 = vshll.u32 %v595_v20, 16  ;;  %v681_v43 = vor.u32 %v680_v23, %v677_v15  ;;  %v1415_v7 = vld [vmem:[%s3064_s21 + $0x8] sm:$0xe] }
  0x2d   : > { %v698_v44 = vshll.u32 %v3161_v17, 16  ;;  %v3195_v46 = vcombine.low %v617_v31, %v631_v32  ;;  %v654_v47 = vrot.slane %v653_v27, 4  ;;  %v668_v51 = vrot.slane %v667_v35, 4  ;;  %v1417_v24 = vld [vmem:[%s3064_s21 + $0x18] sm:$0xe] }
  0x2e   : > { %v695_v48 = vor.u32 %v694_v38, %v691_v34  ;;  %v705_v49 = vrot.slane %v703_v40, 4  ;;  %v708_v50 = vrot.slane %v706_v42, 5  ;;  %v829_v52 = vshll.u32 %v597_v25, 16  ;;  %v1418_v27 = vld [vmem:[%s3064_s21 + $0x20] sm:$0xe] }
  0x2f   : > { %2558 = vmatmul.mubr.msk.bf16.vlgmr.msra.gmra.mrb[0].mxu0 %vm260_vm0, %v3083_v12  ;;  %2578 = vmatmul.mubr.msk.bf16.vlgmr.msra.gmra.mrb[0].mxu1 %vm260_vm0, %v3081_v11  ;;  %v826_v12 = vshrl.u32 %v597_v25, 16  ;;  %v672_v11 = vrot.slane %v670_v14, 5  ;;  %v835_v53 = vshll.u32 %v3190_v45, 16  ;;  %v682_v54 = vrot.slane %v681_v43, 4  ;;  %v1419_v42 = vld [vmem:[%s3064_s21 + $0x28] sm:$0xe] }
  0x30   : > { %2586 = vmatpush3.bf16.msra.mxu0 %v3079_v10  ;;  %2606 = vmatpush3.bf16.msra.mxu1 %v3092_v16  ;;  %v645_v10 = vsel %vm3155_vm3, %v640_v26, %v644_v3  ;;  %v712_v16 = vshll.u32 %v3171_v30, 16  ;;  %v700_v55 = vrot.slane %v698_v44, 5  ;;  %v709_v56 = vor.u32 %v708_v50, %v705_v49  ;;  %v1414_v3 = vld [vmem:[%s3064_s21] sm:$0xe]  ;;  %v1420_v43 = vld [vmem:[%s3064_s21 + $0x30] sm:$0xe] }
  0x31   : > { %2561 = vmatprep.mubr.msk.bf16.mxu0 %vm260_vm0, %v3085_v13  ;;  %2581 = vmatprep.mubr.msk.bf16.mxu1 %vm260_vm0, %v3097_v18  ;;  %v828_v13 = vrot.slane %v826_v12, 4  ;;  %v686_v18 = vrot.slane %v684_v33, 5  ;;  %v3205_v57 = vcombine.low %v631_v32, %v645_v10  ;;  %v696_v59 = vrot.slane %v695_v48, 4  ;;  %v1421_v44 = vld [vmem:[%s3064_s21 + $0x38] sm:$0xe] }
  0x32   : > { %2595 = vmatprep.subr.bf16.mxu0 %v3167_v21  ;;  %2615 = vmatprep.subr.bf16.mxu1 %v3183_v36  ;;  %v831_v60 = vrot.slane %v829_v52, 5  ;;  %v659_v61 = vsel %vm3155_vm3, %v654_v47, %v658_v4  ;;  %v714_v62 = vrot.slane %v712_v16, 5  ;;  %v837_v63 = vrot.slane %v835_v53, 5  ;;  %v1422_v49 = vld [vmem:[%s3064_s21 + $0x40] sm:$0xe] }
  0x33   : > { %v673_v0 = vsel %vm3155_vm3, %v668_v51, %v672_v11  ;;  %v710_v1 = vrot.slane %v709_v56, 4  ;;  %v1445_v4 = vrot.slane %v3108_v22, 5  ;;  %v2332_v9 = vrot.slane %v1414_v3, 9 }
  0x34   : > { %v832_v2 = vor.u32 %v831_v60, %v828_v13  ;;  %v2333_v14 = vrot.slane %v1415_v7, 9  ;;  %v3228_v15 = vcombine.low %v645_v10, %v659_v61  ;;  %v701_v20 = vsel %vm3155_vm3, %v696_v59, %v700_v55  ;;  %v2876_v10 = vld [vmem:[%s3647_s1 + $0x48] sm:$0xff]  }
  0x35   : > { %v1449_v23 = vrot.slane %v3117_v29, 5  ;;  %v3237_v25 = vcombine.low %v659_v61, %v673_v0  ;;  %v3241_v26 = vsel %vm3217_vm6, %v2332_v9, %v1445_v4  ;;  %v1453_v31 = vrot.slane %v3129_v39, 5  ;;  %v1423_v13 = vld [vmem:[%s3064_s21 + $0x48] sm:$0xe]  ;;  %v2879_v9 = vld [vmem:[%s3647_s1 + $0x50] sm:$0xff]  }
  0x36   : > { %v833_v22 = vrot.slane %v832_v2, 4  ;;  %v2335_v33 = vrot.slane %v1417_v24, 9  ;;  %v1457_v34 = vrot.slane %v3133_v41, 5  ;;  %v715_v38 = vsel %vm3155_vm3, %v710_v1, %v714_v62 }
  0x37   : > { %2562 = vmatmul.mubr.msk.bf16.gmra.mrb[4].mxu0 %vm260_vm0, %v3099_v19  ;;  %2582 = vmatmul.mubr.msk.bf16.gmra.mrb[4].mxu1 %vm260_vm0, %v3125_v37  ;;  %v687_v19 = vsel %vm3155_vm3, %v682_v54, %v686_v18  ;;  %v1416_v37 = vld [vmem:[%s3064_s21 + $0x10] sm:$0xe]  ;;  %v3249_v29 = vsel %vm3217_vm6, %v2333_v14, %v1449_v23  ;;  %v2336_v47 = vrot.slane %v1418_v27, 9  ;;  %v1461_v48 = vrot.slane %v3145_v58, 5 }
  0x38   : > { %2587 = vmatprep.mubr.msk.bf16.mxu0 %vm260_vm0, %v3195_v46  ;;  %2607 = vmatprep.mubr.msk.bf16.mxu1 %vm260_vm0, %v3205_v57  ;;  %v2334_v28 = vrot.slane %v1416_v37, 9  ;;  %v3245_v32 = vcombine.low %v673_v0, %v687_v19  ;;  %v3252_v35 = vcombine.low %v687_v19, %v701_v20  ;;  %v2342_v40 = vcombine.low %v3241_v26, %v3249_v29  ;;  %v2877_v58 = vld [vmem:[%s3647_s1 + $0x10] sm:$0xff]   ;;  %v599_v19 = vld [vmem:[%s3064_s21 + $0x48] sm:$0xf] }
  0x39   : > { %v3265_v12 = vsel %vm3155_vm3, %v833_v22, %v837_v63  ;;  %v1458_v41 = vsel %vm3217_vm6, %v2335_v33, %v1457_v34  ;;  %v2337_v16 = vrot.slane %v1419_v42, 9  ;;  %v1465_v51 = vrot.slane %v3151_v5, 5 }
  0x3a   : > { %v1454_v39 = vsel %vm3217_vm6, %v2334_v28, %v1453_v31  ;;  %v1462_v52 = vsel %vm3217_vm6, %v2336_v47, %v1461_v48  ;;  %v2338_v53 = vrot.slane %v1420_v43, 9  ;;  %v1469_v54 = vrot.slane %v3161_v17, 5  ;;  %v600_v17 = vld [vmem:[%s3064_s21 + $0x4c] sm:$0x1]  ;;  %v2880_v28 = vld [vmem:[%s3647_s1 + $0x60] sm:$0xff]   ;;  %s2464_s21 = sshll.u32 %s2954_s18, 10 }
  0x3b   : > { %v3274_v11 = vcombine.low %v1454_v39, %v1458_v41  ;;  %v3277_v50 = vcombine.low %v3249_v29, %v1454_v39  ;;  %v2339_v18 = vrot.slane %v1421_v44, 9  ;;  %v3292_v5 = vcombine.low %v1458_v41, %v1462_v52  ;;  %v2881_v31 = vld [vmem:[%s3647_s1 + $0x40] sm:$0xff]   ;;  %s3588_s30 = scalar_lea.hbm %s3650_s4, %s2464_s21  ;;  %s3598_s18 = scalar_lea.sflag [#allocation3], %s202_s10 }
  0x3c   : > { %v1466_v55 = vsel %vm3217_vm6, %v2337_v16, %v1465_v51  ;;  %v1473_v56 = vrot.slane %v3171_v30, 5  ;;  %v2351_v59 = vrot.slane %v1422_v49, 9  ;;  %v1585_v61 = vrot.slane %v3190_v45, 5 }
  0x3d   : > { %v3301_v60 = vcombine.low %v1462_v52, %v1466_v55  ;;  %v2370_v62 = vrot.slane %v1423_v13, 9  ;;  %v1772_v63 = vrot.slane %v600_v17, 5  ;;  %v2272_v0 = vcombine.low %v701_v20, %v715_v38 }
  0x3e   : > { %v3316_v2 = vsel %vm3217_vm6, %v2351_v59, %v1585_v61  ;;  %v2285_v45 = vcombine.low %v715_v38, %v3265_v12  ;;  %v1169_v14 = vshrl.u32 %v599_v19, 16  ;;  %v1172_v20 = vshll.u32 %v599_v19, 16  ;;  %v2883_v38 = vld [vmem:[%s3647_s1] sm:$0xff]  }
  0x3f   : > { %2588 = vmatmul.mubr.msk.bf16.vlgmr.msra.gmra.mrb[0].mxu0 %vm260_vm0, %v3228_v15  ;;  %2608 = vmatmul.mubr.msk.bf16.vlgmr.msra.gmra.mrb[8].mxu1 %vm260_vm0, %v3237_v25  ;;  %v3324_v7 = vsel %vm3217_vm6, %v2370_v62, %v1772_v63  ;;  %v1178_v37 = vshll.u32 %v600_v17, 16 }
  0x40   : > { %2596 = vmatpush3.bf16.msra.mxu0 %v3167_v21  ;;  %2616 = vmatpush3.bf16.msra.mxu1 %v3183_v36  ;;  %v1470_v21 = vsel %vm3217_vm6, %v2338_v53, %v1469_v54  ;;  %v1474_v36 = vsel %vm3217_vm6, %v2339_v18, %v1473_v56  ;;  %v2371_v4 = vcombine.low %v3316_v2, %v3324_v7  ;;  %v1174_v22 = vrot.slane %v1172_v20, 5 }
  0x41   : > { %2591 = vmatprep.mubr.msk.bf16.mxu0 %vm260_vm0, %v3245_v32  ;;  %2611 = vmatprep.mubr.msk.bf16.mxu1 %vm260_vm0, %v3252_v35  ;;  %v3308_v30 = vcombine.low %v1466_v55, %v1470_v21  ;;  %v3312_v1 = vcombine.low %v1470_v21, %v1474_v36  ;;  %v3320_v3 = vcombine.low %v1474_v36, %v3316_v2  ;;  %v1180_v27 = vrot.slane %v1178_v37, 5 }
  0x42   : > { %2625 = vmatprep.subr.bf16.mxu1 %v2876_v10  ;;  %2645 = vmatprep.subr.bf16.mxu0 %v2877_v58 }
  0x47   : > { %2592 = vmatmul.mubr.msk.bf16.gmra.mrb[4].mxu0 %vm260_vm0, %v2272_v0  ;;  %2612 = vmatmul.mubr.msk.bf16.gmra.mrb[12].mxu1 %vm260_vm0, %v2285_v45 }
  0x48   : > { %2597 = vmatprep.mubr.msk.bf16.mxu0 %vm260_vm0, %v3205_v57  ;;  %2617 = vmatprep.mubr.msk.bf16.mxu1 %vm260_vm0, %v3195_v46  ;;  %v1171_v46 = vrot.slane %v1169_v14, 4 }
  0x4a   : > { %v1175_v23 = vor.u32 %v1174_v22, %v1171_v46 }
  0x4c   : > { %v1176_v24 = vrot.slane %v1175_v23, 4 }
  0x4e   : > { %v1181_v33 = vsel %vm3155_vm3, %v1176_v24, %v1180_v27 }
  0x4f   : > { %2598 = vmatmul.mubr.msk.bf16.vlgmr.msra.gmra.mrb[0].mxu0 %vm260_vm0, %v3237_v25  ;;  %2618 = vmatmul.mubr.msk.bf16.vlgmr.msra.gmra.mrb[8].mxu1 %vm260_vm0, %v3228_v15  ;;  %v2314_v34 = vcombine.low %v3265_v12, %v1181_v33 }
  0x50   : > { %2646 = vmatpush3.bf16.msra.mxu0 %v2877_v58  ;;  %2626 = vmatpush3.bf16.msra.mxu1 %v2876_v10 }
  0x51   : > { %2601 = vmatprep.mubr.msk.bf16.mxu0 %vm260_vm0, %v3252_v35  ;;  %2621 = vmatprep.mubr.msk.bf16.mxu1 %vm260_vm0, %v3245_v32 }
  0x52   : > { %2635 = vmatprep.subr.bf16.mxu1 %v2878_v6  ;;  %2655 = vmatprep.subr.bf16.mxu0 %v2879_v9 }
  0x57   : > { %2602 = vmatmul.mubr.msk.bf16.gmra.mrb[4].mxu0 %vm260_vm0, %v2285_v45  ;;  %2622 = vmatmul.mubr.msk.bf16.gmra.mrb[12].mxu1 %vm260_vm0, %v2272_v0 }
  0x58   : > { %2647 = vmatprep.mubr.msk.bf16.mxu0 %vm260_vm0, %v3228_v15  ;;  %2627 = vmatprep.mubr.msk.bf16.mxu1 %vm260_vm0, %v3205_v57 }
  0x5f   : > { %2648 = vmatmul.mubr.msk.bf16.vlgmr.msra.gmra.mrb[8].mxu0 %vm260_vm0, %v3245_v32  ;;  %2628 = vmatmul.mubr.msk.bf16.vlgmr.msra.gmra.mrb[0].mxu1 %vm260_vm0, %v3237_v25 }
  0x60   : > { %2656 = vmatpush3.bf16.msra.mxu0 %v2879_v9  ;;  %2636 = vmatpush3.bf16.msra.mxu1 %v2878_v6 }
  0x61   : > { %2631 = vmatprep.mubr.msk.bf16.mxu1 %vm260_vm0, %v3252_v35  ;;  %2651 = vmatprep.mubr.msk.bf16.mxu0 %vm260_vm0, %v2272_v0 }
  0x62   : > { %2665 = vmatprep.subr.bf16.mxu1 %v2880_v28  ;;  %2685 = vmatprep.subr.bf16.mxu0 %v2881_v31 }
  0x67   : > { %2652 = vmatmul.mubr.msk.bf16.gmra.mrb[12].mxu0 %vm260_vm0, %v2314_v34  ;;  %2632 = vmatmul.mubr.msk.bf16.gmra.mrb[4].mxu1 %vm260_vm0, %v2285_v45 }
  0x68   : > { %2657 = vmatprep.mubr.msk.bf16.mxu0 %vm260_vm0, %v3205_v57  ;;  %2637 = vmatprep.mubr.msk.bf16.mxu1 %vm260_vm0, %v3228_v15  ;;  %v3431_v57 = vld [vmem:[%s3648_s2] ss:$0 sm:$0xff] }
  0x69   : > { %v3437_v15 = vld [vmem:[%s3649_s3] ss:$0 sm:$0xff] }
  0x6f   : > { %2658 = vmatmul.mubr.msk.bf16.vlgmr.msra.gmra.mrb[8].mxu0 %vm260_vm0, %v3237_v25  ;;  %2638 = vmatmul.mubr.msk.bf16.vlgmr.msra.gmra.mrb[0].mxu1 %vm260_vm0, %v3245_v32 }
  0x70   : > { %2686 = vmatpush3.bf16.msra.mxu0 %v2881_v31  ;;  %2666 = vmatpush3.bf16.msra.mxu1 %v2880_v28 }
  0x71   : > { %2641 = vmatprep.mubr.msk.bf16.mxu1 %vm260_vm0, %v2272_v0  ;;  %2661 = vmatprep.mubr.msk.bf16.mxu0 %vm260_vm0, %v3252_v35 }
  0x72   : > { %2675 = vmatprep.subr.bf16.mxu1 %v2882_v8  ;;  %2695 = vmatprep.subr.bf16.mxu0 %v2883_v38 }
  0x77   : > { %2662 = vmatmul.mubr.msk.bf16.gmra.mrb[12].mxu0 %vm260_vm0, %v2285_v45  ;;  %2642 = vmatmul.mubr.msk.bf16.gmra.mrb[4].mxu1 %vm260_vm0, %v2314_v34 }
  0x78   : > { %2687 = vmatprep.mubr.msk.bf16.mxu0 %vm260_vm0, %v3277_v50  ;;  %2667 = vmatprep.mubr.msk.bf16.mxu1 %vm260_vm0, %v2342_v40 }
  0x7f   : > { %2688 = vmatmul.mubr.msk.bf16.vlgmr.msra.gmra.mrb[8].mxu0 %vm260_vm0, %v3292_v5  ;;  %2668 = vmatmul.mubr.msk.bf16.vlgmr.msra.gmra.mrb[8].mxu1 %vm260_vm0, %v3274_v11 }
  0x80   : > { %2696 = vmatpush3.bf16.msra.mxu0 %v2883_v38  ;;  %2676 = vmatpush3.bf16.msra.mxu1 %v2882_v8 }
  0x81   : > { %2671 = vmatprep.mubr.msk.bf16.mxu1 %vm260_vm0, %v3301_v60  ;;  %2691 = vmatprep.mubr.msk.bf16.mxu0 %vm260_vm0, %v3308_v30 }
  0x87   : > { %2692 = vmatmul.mubr.msk.bf16.gmra.mrb[12].mxu0 %vm260_vm0, %v3320_v3  ;;  %2672 = vmatmul.mubr.msk.bf16.gmra.mrb[12].mxu1 %vm260_vm0, %v3312_v1 }
  0x88   : > { %2697 = vmatprep.mubr.msk.bf16.mxu0 %vm260_vm0, %v3274_v11  ;;  %2677 = vmatprep.mubr.msk.bf16.mxu1 %vm260_vm0, %v3277_v50 }
  0x8f   : > { %2698 = vmatmul.mubr.msk.bf16.vlgmr.msra.gmra.mrb[8].mxu0 %vm260_vm0, %v3301_v60  ;;  %2678 = vmatmul.mubr.msk.bf16.vlgmr.msra.gmra.mrb[8].mxu1 %vm260_vm0, %v3292_v5 }
  0x90   : > { %2701 = vmatprep.mubr.msk.bf16.mxu0 %vm260_vm0, %v3312_v1  ;;  %2681 = vmatprep.mubr.msk.bf16.mxu1 %vm260_vm0, %v3308_v30 }
  0x97   : > { %2702 = vmatmul.mubr.msk.bf16.gmra.mrb[12].mxu0 %vm260_vm0, %v2371_v4  ;;  %2682 = vmatmul.mubr.msk.bf16.gmra.mrb[12].mxu1 %vm260_vm0, %v3320_v3 }
 0x122   : > { %v2599_v25 = vpop.f32.mrb[0].mxu0 }
 0x123   : > { %v1868_v26 = vmul.f32 %v2599_v25, %v3431_v57  ;;  %v899_v32 = vpop.f32.mrb[1].mxu0 }
 0x124   : > { %v1866_v29 = vmul.f32 %v3431_v57, %v899_v32  ;;  %v2600_v35 = vpop.f32.mrb[2].mxu0 }
 0x125   : > { %v1882_v40 = vadd.f32 %v3437_v15, %v1868_v26  ;;  %v1869_v39 = vmul.f32 %v2600_v35, %v3431_v57  ;;  %v902_v42 = vpop.f32.mrb[3].mxu0 }
 0x126   : > { %v1880_v43 = vadd.f32 %v3437_v15, %v1866_v29  ;;  %v1867_v44 = vmul.f32 %v3431_v57, %v902_v42 }
 0x127   : > { %v2434_v12 = vpack.c.bf16 %v1882_v40, %v1882_v40  ;;  %v1883_v41 = vadd.f32 %v3437_v15, %v1869_v39 }
 0x128   : > { %v2432_v47 = vpack.c.bf16 %v1880_v43, %v1880_v43  ;;  %v1881_v48 = vadd.f32 %v3437_v15, %v1867_v44 }
 0x129   : > { %v2435_v49 = vpack.c.bf16 %v1883_v41, %v1883_v41  ;;  %1923 = vst.msk [vmem:[%s3449_s14 + $0x10] sm:$0xf] %vm1920_vm7, %v2434_v12 }
 0x12a   : > { %v2433_v10 = vpack.c.bf16 %v1881_v48, %v1881_v48  ;;  %v2603_v11 = vpop.f32.mrb[4].mxu0  ;;  %1921 = vst.msk [vmem:[%s3449_s14] sm:$0xf] %vm1920_vm7, %v2432_v47 }
 0x12b   : > { %v1872_v50 = vmul.f32 %v2603_v11, %v3431_v57  ;;  %v915_v16 = vpop.f32.mrb[5].mxu0  ;;  %1924 = vst.msk [vmem:[%s3449_s14 + $0x18] sm:$0xf] %vm1920_vm7, %v2435_v49 }
 0x12c   : > { %v1870_v51 = vmul.f32 %v3431_v57, %v915_v16  ;;  %v2604_v13 = vpop.f32.mrb[6].mxu0  ;;  %1922 = vst.msk [vmem:[%s3449_s14 + $0x8] sm:$0xf] %vm1920_vm7, %v2433_v10 }
 0x12d   : > { %v1886_v58 = vadd.f32 %v3437_v15, %v1872_v50  ;;  %v1873_v52 = vmul.f32 %v2604_v13, %v3431_v57  ;;  %v918_v53 = vpop.f32.mrb[7].mxu0 }
 0x12e   : > { %v1884_v54 = vadd.f32 %v3437_v15, %v1870_v51  ;;  %v1871_v18 = vmul.f32 %v3431_v57, %v918_v53 }
 0x12f   : > { %v2438_v5 = vpack.c.bf16 %v1886_v58, %v1886_v58  ;;  %v1887_v55 = vadd.f32 %v3437_v15, %v1873_v52 }
 0x130   : > { %v2436_v56 = vpack.c.bf16 %v1884_v54, %v1884_v54  ;;  %v1885_v59 = vadd.f32 %v3437_v15, %v1871_v18 }
 0x131   : > { %v2439_v17 = vpack.c.bf16 %v1887_v55, %v1887_v55  ;;  %1927 = vst.msk [vmem:[%s3449_s14 + $0x30] sm:$0xf] %vm1920_vm7, %v2438_v5 }
 0x132   : > { %v2437_v60 = vpack.c.bf16 %v1885_v59, %v1885_v59  ;;  %1925 = vst.msk [vmem:[%s3449_s14 + $0x20] sm:$0xf] %vm1920_vm7, %v2436_v56 }
 0x133   : > { %1928 = vst.msk [vmem:[%s3449_s14 + $0x38] sm:$0xf] %vm1920_vm7, %v2439_v17 }
 0x134   : > { %1926 = vst.msk [vmem:[%s3449_s14 + $0x28] sm:$0xf] %vm1920_vm7, %v2437_v60 }
 0x142   : > { %v2639_v21 = vpop.f32.mrb[0].mxu1 }
 0x143   : > { %v2004_v61 = vmul.f32 %v2639_v21, %v3431_v57  ;;  %v1230_v62 = vpop.f32.mrb[1].mxu1 }
 0x144   : > { %v2002_v30 = vmul.f32 %v3431_v57, %v1230_v62  ;;  %v2640_v36 = vpop.f32.mrb[2].mxu1 }
 0x145   : > { %v2012_v63 = vadd.f32 %v3437_v15, %v2004_v61  ;;  %v2005_v0 = vmul.f32 %v2640_v36, %v3431_v57  ;;  %v1233_v1 = vpop.f32.mrb[3].mxu1 }
 0x146   : > { %v2010_v2 = vadd.f32 %v3437_v15, %v2002_v30  ;;  %v2003_v45 = vmul.f32 %v3431_v57, %v1233_v1 }
 0x147   : > { %v2450_v3 = vpack.c.bf16 %v2012_v63, %v2012_v63  ;;  %v2013_v7 = vadd.f32 %v3437_v15, %v2005_v0 }
 0x148   : > { %v2448_v4 = vpack.c.bf16 %v2010_v2, %v2010_v2  ;;  %v2011_v19 = vadd.f32 %v3437_v15, %v2003_v45 }
 0x149   : > { %v2451_v6 = vpack.c.bf16 %v2013_v7, %v2013_v7  ;;  %2405 = vst.msk [vmem:[%s3449_s14 + $0x14] sm:$0xf] %vm1920_vm7, %v2450_v3 }
 0x14a   : > { %v2449_v9 = vpack.c.bf16 %v2011_v19, %v2011_v19  ;;  %v2643_v14 = vpop.f32.mrb[4].mxu1  ;;  %2403 = vst.msk [vmem:[%s3449_s14 + $0x4] sm:$0xf] %vm1920_vm7, %v2448_v4 }
 0x14b   : > { %v2008_v20 = vmul.f32 %v2643_v14, %v3431_v57  ;;  %v1246_v46 = vpop.f32.mrb[5].mxu1  ;;  %2406 = vst.msk [vmem:[%s3449_s14 + $0x1c] sm:$0xf] %vm1920_vm7, %v2451_v6 }
 0x14c   : > { %v2006_v22 = vmul.f32 %v3431_v57, %v1246_v46  ;;  %v2644_v23 = vpop.f32.mrb[6].mxu1  ;;  %2404 = vst.msk [vmem:[%s3449_s14 + $0xc] sm:$0xf] %vm1920_vm7, %v2449_v9 }
 0x14d   : > { %v2016_v37 = vadd.f32 %v3437_v15, %v2008_v20  ;;  %v2009_v24 = vmul.f32 %v2644_v23, %v3431_v57  ;;  %v1249_v27 = vpop.f32.mrb[7].mxu1 }
 0x14e   : > { %v2014_v28 = vadd.f32 %v3437_v15, %v2006_v22  ;;  %v2007_v31 = vmul.f32 %v3431_v57, %v1249_v27 }
 0x14f   : > { %v2454_v33 = vpack.c.bf16 %v2016_v37, %v2016_v37  ;;  %v2017_v34 = vadd.f32 %v3437_v15, %v2009_v24 }
 0x150   : > { %v2452_v8 = vpack.c.bf16 %v2014_v28, %v2014_v28  ;;  %v2015_v38 = vadd.f32 %v3437_v15, %v2007_v31 }
 0x151   : > { %v2455_v25 = vpack.c.bf16 %v2017_v34, %v2017_v34  ;;  %2409 = vst.msk [vmem:[%s3449_s14 + $0x34] sm:$0xf] %vm1920_vm7, %v2454_v33 }
 0x152   : > { %v2453_v26 = vpack.c.bf16 %v2015_v38, %v2015_v38  ;;  %2407 = vst.msk [vmem:[%s3449_s14 + $0x24] sm:$0xf] %vm1920_vm7, %v2452_v8 }
 0x153   : > { %2410 = vst.msk [vmem:[%s3449_s14 + $0x3c] sm:$0xf] %vm1920_vm7, %v2455_v25 }
 0x154   : > { %2408 = vst.msk [vmem:[%s3449_s14 + $0x2c] sm:$0xf] %vm1920_vm7, %v2453_v26 }
 0x162   : > { %v2699_v32 = vpop.f32.mrb[8].mxu0  ;;  %v2679_v29 = vpop.f32.mrb[8].mxu1 }
 0x163   : > { %v2061_v35 = vmul.f32 %v2699_v32, %v3431_v57  ;;  %v1821_v40 = vpop.f32.mrb[9].mxu0  ;;  %v1931_v39 = vmul.f32 %v2679_v29, %v3431_v57  ;;  %v1647_v42 = vpop.f32.mrb[9].mxu1 }
 0x164   : > { %v2700_v43 = vpop.f32.mrb[10].mxu0  ;;  %v1929_v44 = vmul.f32 %v3431_v57, %v1647_v42  ;;  %v2680_v12 = vpop.f32.mrb[10].mxu1  ;;  %v2059_v50 = vmul.f32 %v3431_v57, %v1821_v40 }
 0x165   : > { %v1824_v41 = vpop.f32.mrb[11].mxu0  ;;  %v2069_v47 = vadd.f32 %v3437_v15, %v2061_v35  ;;  %v1932_v48 = vmul.f32 %v2680_v12, %v3431_v57  ;;  %v1650_v49 = vpop.f32.mrb[11].mxu1  ;;  %v1939_v10 = vadd.f32 %v3437_v15, %v1931_v39  ;;  %v2062_v13 = vmul.f32 %v2700_v43, %v3431_v57 }
 0x166   : > { %v1937_v11 = vadd.f32 %v3437_v15, %v1929_v44  ;;  %v2067_v54 = vadd.f32 %v3437_v15, %v2059_v50  ;;  %v1930_v18 = vmul.f32 %v3431_v57, %v1650_v49  ;;  %v2060_v17 = vmul.f32 %v3431_v57, %v1824_v41 }
 0x167   : > { %v2458_v16 = vpack.c.bf16 %v2069_v47, %v2069_v47  ;;  %v1940_v51 = vadd.f32 %v3437_v15, %v1932_v48  ;;  %v2442_v58 = vpack.c.bf16 %v1939_v10, %v1939_v10  ;;  %v2070_v59 = vadd.f32 %v3437_v15, %v2062_v13 }
 0x168   : > { %v2440_v53 = vpack.c.bf16 %v1937_v11, %v1937_v11  ;;  %v2456_v36 = vpack.c.bf16 %v2067_v54, %v2067_v54  ;;  %v1938_v63 = vadd.f32 %v3437_v15, %v1930_v18  ;;  %v2068_v2 = vadd.f32 %v3437_v15, %v2060_v17 }
 0x169   : > { %2103 = vrot.lane.b32.xlu0 %v2458_v16, %s2964_s22  ;;  %1973 = vrot.lane.b32.xlu1 %v2442_v58, %s2964_s22  ;;  %v2443_v56 = vpack.c.bf16 %v1940_v51, %v1940_v51  ;;  %v2459_v1 = vpack.c.bf16 %v2070_v59, %v2070_v59 }
 0x16a   : > { %v2703_v52 = vpop.f32.mrb[12].mxu0  ;;  %v2683_v5 = vpop.f32.mrb[12].mxu1  ;;  %v2441_v3 = vpack.c.bf16 %v1938_v63, %v1938_v63  ;;  %v2457_v19 = vpack.c.bf16 %v2068_v2, %v2068_v2 }
 0x16b   : > { %v1837_v55 = vpop.f32.mrb[13].mxu0  ;;  %v1663_v60 = vpop.f32.mrb[13].mxu1  ;;  %v1935_v0 = vmul.f32 %v2683_v5, %v3431_v57  ;;  %v2065_v24 = vmul.f32 %v2703_v52, %v3431_v57 }
 0x16c   : > { %v2704_v21 = vpop.f32.mrb[14].mxu0  ;;  %v2684_v61 = vpop.f32.mrb[14].mxu1  ;;  %v1933_v4 = vmul.f32 %v3431_v57, %v1663_v60  ;;  %v2063_v46 = vmul.f32 %v3431_v57, %v1837_v55 }
 0x16d   : > { %1969 = vrot.lane.b32.xlu0 %v2440_v53, %s2964_s22  ;;  %v1840_v62 = vpop.f32.mrb[15].mxu0  ;;  %1975 = vrot.lane.b32.xlu1 %v2443_v56, %s2964_s22  ;;  %v1666_v30 = vpop.f32.mrb[15].mxu1  ;;  %v1936_v45 = vmul.f32 %v2684_v61, %v3431_v57  ;;  %v1943_v7 = vadd.f32 %v3437_v15, %v1935_v0  ;;  %v2066_v31 = vmul.f32 %v2704_v21, %v3431_v57 }
 0x16e   : > { %v1934_v9 = vmul.f32 %v3431_v57, %v1666_v30  ;;  %v1941_v20 = vadd.f32 %v3437_v15, %v1933_v4  ;;  %v2064_v37 = vmul.f32 %v3431_v57, %v1840_v62  ;;  %v2071_v28 = vadd.f32 %v3437_v15, %v2063_v46 }
 0x16f   : > { %v1944_v6 = vadd.f32 %v3437_v15, %v1936_v45  ;;  %v2446_v14 = vpack.c.bf16 %v1943_v7, %v1943_v7  ;;  %v2073_v8 = vadd.f32 %v3437_v15, %v2065_v24  ;;  %v2074_v25 = vadd.f32 %v3437_v15, %v2066_v31 }
 0x170   : > { %v1942_v23 = vadd.f32 %v3437_v15, %v1934_v9  ;;  %v2444_v27 = vpack.c.bf16 %v1941_v20, %v1941_v20  ;;  %v2072_v34 = vadd.f32 %v3437_v15, %v2064_v37  ;;  %v2460_v38 = vpack.c.bf16 %v2071_v28, %v2071_v28 }
 0x171   : > { %2099 = vrot.lane.b32.xlu0 %v2456_v36, %s2964_s22  ;;  %2105 = vrot.lane.b32.xlu1 %v2459_v1, %s2964_s22  ;;  %v2447_v22 = vpack.c.bf16 %v1944_v6, %v1944_v6  ;;  %v2462_v57 = vpack.c.bf16 %v2073_v8, %v2073_v8  ;;  %v2463_v32 = vpack.c.bf16 %v2074_v25, %v2074_v25 }
 0x172   : > { %v2445_v33 = vpack.c.bf16 %v1942_v23, %v1942_v23  ;;  %v2461_v26 = vpack.c.bf16 %v2072_v34, %v2072_v34 }
 0x175   : > { %1971 = vrot.lane.b32.xlu0 %v2441_v3, %s2964_s22  ;;  %2101 = vrot.lane.b32.xlu1 %v2457_v19, %s2964_s22 }
 0x179   : > { %1981 = vrot.lane.b32.xlu0 %v2446_v14, %s2964_s22  ;;  %1983 = vrot.lane.b32.xlu1 %v2447_v22, %s2964_s22 }
 0x17d   : > { %1977 = vrot.lane.b32.xlu0 %v2444_v27, %s2964_s22  ;;  %1979 = vrot.lane.b32.xlu1 %v2445_v33, %s2964_s22 }
 0x181   : > { %2107 = vrot.lane.b32.xlu0 %v2460_v38, %s2964_s22  ;;  %2109 = vrot.lane.b32.xlu1 %v2461_v26, %s2964_s22 }
 0x185   : > { %2111 = vrot.lane.b32.xlu0 %v2462_v57, %s2964_s22  ;;  %2113 = vrot.lane.b32.xlu1 %v2463_v32, %s2964_s22 }
 0x1db   : > { %v2104_v29 = vpop.permute.xlu0 %2103  ;;  %v1974_v35 = vpop.permute.xlu1 %1973 }
 0x1dc   : > { %2421 = vst.msk [vmem:[%s3449_s14 + $0x14] sm:$0xf] %vm1993_vm8, %v2104_v29  ;;  %1996 = vst.msk [vmem:[%s3449_s14 + $0x10] sm:$0xf] %vm1993_vm8, %v1974_v35 }
 0x1df   : > { %v1970_v15 = vpop.permute.xlu0 %1969  ;;  %v1976_v40 = vpop.permute.xlu1 %1975 }
 0x1e0   : > { %1994 = vst.msk [vmem:[%s3449_s14] sm:$0xf] %vm1993_vm8, %v1970_v15  ;;  %1997 = vst.msk [vmem:[%s3449_s14 + $0x18] sm:$0xf] %vm1993_vm8, %v1976_v40 }
 0x1e3   : > { %v2100_v39 = vpop.permute.xlu0 %2099  ;;  %v2106_v42 = vpop.permute.xlu1 %2105 }
 0x1e4   : > { %2419 = vst.msk [vmem:[%s3449_s14 + $0x4] sm:$0xf] %vm1993_vm8, %v2100_v39  ;;  %2422 = vst.msk [vmem:[%s3449_s14 + $0x1c] sm:$0xf] %vm1993_vm8, %v2106_v42 }
 0x1e7   : > { %v1972_v43 = vpop.permute.xlu0 %1971  ;;  %v2102_v44 = vpop.permute.xlu1 %2101 }
 0x1e8   : > { %1995 = vst.msk [vmem:[%s3449_s14 + $0x8] sm:$0xf] %vm1993_vm8, %v1972_v43  ;;  %2420 = vst.msk [vmem:[%s3449_s14 + $0xc] sm:$0xf] %vm1993_vm8, %v2102_v44 }
 0x1eb   : > { %v1982_v12 = vpop.permute.xlu0 %1981  ;;  %v1984_v41 = vpop.permute.xlu1 %1983 }
 0x1ec   : > { %2000 = vst.msk [vmem:[%s3449_s14 + $0x30] sm:$0xf] %vm1993_vm8, %v1982_v12  ;;  %2001 = vst.msk [vmem:[%s3449_s14 + $0x38] sm:$0xf] %vm1993_vm8, %v1984_v41 }
 0x1ef   : > { %v1978_v47 = vpop.permute.xlu0 %1977  ;;  %v1980_v48 = vpop.permute.xlu1 %1979 }
 0x1f0   : > { %1998 = vst.msk [vmem:[%s3449_s14 + $0x20] sm:$0xf] %vm1993_vm8, %v1978_v47  ;;  %1999 = vst.msk [vmem:[%s3449_s14 + $0x28] sm:$0xf] %vm1993_vm8, %v1980_v48 }
 0x1f3   : > { %v2108_v49 = vpop.permute.xlu0 %2107  ;;  %v2110_v10 = vpop.permute.xlu1 %2109 }
 0x1f4   : > { %2423 = vst.msk [vmem:[%s3449_s14 + $0x24] sm:$0xf] %vm1993_vm8, %v2108_v49  ;;  %2424 = vst.msk [vmem:[%s3449_s14 + $0x2c] sm:$0xf] %vm1993_vm8, %v2110_v10 }
 0x1f7   : > { %v2112_v11 = vpop.permute.xlu0 %2111  ;;  %v2114_v50 = vpop.permute.xlu1 %2113 }
 0x1f8   : > { %2425 = vst.msk [vmem:[%s3449_s14 + $0x34] sm:$0xf] %vm1993_vm8, %v2112_v11  ;;  %2426 = vst.msk [vmem:[%s3449_s14 + $0x3c] sm:$0xf] %vm1993_vm8, %v2114_v50 }
 0x1f9   : > { %2897 = shalt.err (!%p2894_p5)
}
 0x1fa   : > { %s2898_s9 = scalar_lea.hbm %s3588_s30, 1024  ;;  %s2902_s12 = scalar_lea.hbm %s3650_s4, 2048 }
 0x1fb   : > { %p2899_p6 = scmp.ne.s32.totalorder %s3588_s30, %s2898_s9  ;;  %p2903_p10 = scmp.lt.u32.totalorder %s3588_s30, %s3650_s4 }
 0x1fc   : > { %p2904_p11 = scmp.lt.u32.totalorder %s2902_s12, %s2898_s9  ;;  %p2906_p13 = scmp.lt.u32.totalorder %s2898_s9, %s3588_s30 }
 0x1fd   : > { %p2900_p7 = pnand %p2899_p6, %p3032_p4 }
 0x1fe   : > { %p2905_p12 = por %p2904_p11, %p2903_p10 }
 0x1ff   : > { %p2901_p9 = pneg %p2900_p7 }
 0x200   : > { %p2907_p0 = por %p2906_p13, %p2905_p12 }
 0x202   : > { %p2908_p1 = pnand %p2907_p0, %p2901_p9 }
 0x204   : > { %2911 = shalt.err (!%p2908_p1)
}
 0x205   : > { %s2966_s21 = smov 4  }
 0x206   : > { %2802 = dma.vmem_to_hbm [thread:$0]  (%p3032_p4), %s3590_s24, 1024, %s3588_s30, %s3598_s18, %s2964_s22, %s2964_s22, %s2966_s21  }
 0x207 PF: > { %p2808_p2 = scmp.ge.s32.totalorder %s2962_s20, 2  ;;  %s2163_s26 = sand.u32 1, %s2942_s15  }
 0x208   : > { %s2164_s29 = scalar_lea.sflag [#allocation3], %s2163_s26 }
 0x209   : > { %p2805_p3 = pnand %p2808_p2, %p3039_p8 }
 0x20b   : > { %2937 = dma.done.wait (!%p2805_p3), %s2164_s29, 1024  }
 0x20c   : > { %2939 = vsyncadd (!%p2805_p3), %s2164_s29, 4294966272  ;;  %s17_s20 = sadd.s32 1, %s2962_s20   ;;  %s3657_s15 = smov %s2946_s16 }
 0x20d   : > { %p14_p5 = scmp.ge.s32.totalorder %s17_s20, 4   ;;  %s3658_s16 = smov %s2950_s17 }
 0x20e   : > { %s3659_s17 = smov %s3045_s28  ;;  %s3660_s18 = smov %s2958_s19 }
 0x20f   : > { %s3661_s19 = smov %s3663_s23  ;;  %16 = sbr.rel (!%p14_p5) target bundleno = 4 (0x4), region = 88 }
 0x216   :  { %2169 = vsyncpa [#allocation3], 1 }
 0x217   :  { %2171 = vsyncpa [#allocation3 + $0x1], 1 }

</bundles_post_ra>
